<compile_context>
chip_gen: v5e
topology: v5e:2x2
jax: 0.10.0
libtpu: 0.0.40
codegen_flags: <defaults>
</compile_context>

<pallas_src>
import functools
import numpy as np
import jax
import jax.numpy as jnp
from jax.experimental import pallas as pl
from jax.experimental.pallas import tpu as pltpu


def _round_up(v, m):
    return (v + m - 1) // m * m


# ----------------------------------------------------------------------------
# Pallas kernels
# ----------------------------------------------------------------------------
def _modconv_kernel(*refs, K, Wp, Mlane, fold, demod, has_noise, act,
                    fuse_rgb, has_prev, neg_slope=0.2):
    """Fused Conv2DMod (+demod +rank-1 noise +leaky-relu [+fused 1x1 RGB conv]).

    Refs (per sample b; batch dim squeezed away), in order:
      scale_ref    : (Cin_pad, 1)  f32   style + 1
      [d_ref       : (Cout, 1)     f32]  demod factor              (if demod)
      [nmap_ref    : (1, Mlane)    f32]  per-pixel noise map       (if has_noise)
      [nw_ref      : (Cout, 1)     f32]  noise Linear weight       (if has_noise)
      [nb_ref      : (Cout, 1)     f32]  noise Linear bias         (if has_noise)
      xf_ref       : (Cin_pad, Nf) bf16  zero-padded input, flattened (Hq*Wp)
      w_ref        : (Cout, K*K*Cin_pad) bf16  [fold]  or  (K*K, Cout, Cin_pad)
      [rgb_scale   : (Cout, 1)     f32]  rgb style + 1             (if fuse_rgb)
      [rgb_w_ref   : (Crgb, Cout)  bf16]                           (if fuse_rgb)
      [prev_ref    : (Crgb, Mlane) f32]  prev_rgb residual         (if has_prev)
      out_ref      : (Cout, Mlane) out dtype (bf16)
      [rgb_ref     : (Crgb, Mlane) f32]                            (if fuse_rgb)
      [stack_ref   : (K*K*Cin_pad, Mlane) bf16 VMEM scratch]       (if fold)
    """
    it = iter(refs)
    scale_ref = next(it)
    d_ref = next(it) if demod else None
    if has_noise:
        nmap_ref = next(it)
        nw_ref = next(it)
        nb_ref = next(it)
    xf_ref = next(it)
    w_ref = next(it)
    if fuse_rgb:
        rgb_scale_ref = next(it)
        rgb_w_ref = next(it)
        prev_ref = next(it) if has_prev else None
    out_ref = next(it)
    rgb_ref = next(it) if fuse_rgb else None
    stack_ref = next(it) if fold else None

    # Activation-side modulation: multiply + (implicit) cast done ONCE, in bf16.
    xs = xf_ref[...] * scale_ref[...].astype(jnp.bfloat16)       # (Cin_pad, Nf)

    if fold:
        # Stack the K*K shifted tap slabs (sublane-aligned stores: Cin_pad % 16 == 0)
        # and run a single MXU matmul with contraction K*K*Cin_pad.
        cin = xs.shape[0]
        for ky in range(K):
            for kx in range(K):
                t = ky * K + kx
                off = ky * Wp + kx
                stack_ref[t * cin:(t + 1) * cin, :] = xs[:, off:off + Mlane]
        y = jnp.dot(w_ref[...], stack_ref[...],
                    preferred_element_type=jnp.float32)           # (Cout, Mlane)
    else:
        y = None
        for ky in range(K):
            for kx in range(K):
                off = ky * Wp + kx
                part = jnp.dot(w_ref[ky * K + kx], xs[:, off:off + Mlane],
                               preferred_element_type=jnp.float32)
                y = part if y is None else y + part

    if demod:
        y = y * d_ref[...]                                        # per-(b,Cout) scale
    if has_noise:
        y = y + nmap_ref[...] * nw_ref[...] + nb_ref[...]         # rank-1 noise FMA
    if act:
        y = jnp.where(y >= 0.0, y, y * neg_slope)
    out_ref[...] = y.astype(out_ref.dtype)

    if fuse_rgb:
        # 1x1 modulated RGB conv (demod=False) on the already-resident tile.
        yr = (y * rgb_scale_ref[...]).astype(jnp.bfloat16)        # (Cout, Mlane)
        rgb = jnp.dot(rgb_w_ref[...], yr, preferred_element_type=jnp.float32)
        if has_prev:
            rgb = rgb + prev_ref[...]
        rgb_ref[...] = rgb


def _blur_kernel(xf_ref, out_ref, *, Wp, Mlane):
    """Separable 3x3 [1,2,1]x[1,2,1]/16 blur on a reflect-padded flat slab."""
    x = xf_ref[...]                                               # (BC, Nf)
    L = Mlane + 2 * Wp
    th = (x[:, 0:L] + 2.0 * x[:, 1:L + 1] + x[:, 2:L + 2]) * 0.25
    out_ref[...] = (th[:, 0:Mlane] + 2.0 * th[:, Wp:Wp + Mlane]
                    + th[:, 2 * Wp:2 * Wp + Mlane]) * 0.25


# ----------------------------------------------------------------------------
# Wrappers around pallas_call
# ----------------------------------------------------------------------------
def mod_conv2d_fused(x, style, weight, *, demod=True, noise=None, noise_w=None,
                     noise_b=None, act=False, rgb_style=None, rgb_weight=None,
                     prev_rgb=None, out_dtype=jnp.bfloat16, eps=1e-8,
                     fold_taps_max=1024):
    """Conv2DMod ('same', stride 1) fused with demod / rank-1 noise / leaky-relu
    and (optionally) the 1x1 modulated RGB conv + prev_rgb residual.

    x: (B,Cin,H,W)  style: (B,Cin)  weight: (Cout,Cin,K,K)
    noise: (B,H,W) scalar map; noise_w/noise_b: (Cout,)
    rgb_style: (B,Cout); rgb_weight: (Crgb,Cout,1,1); prev_rgb: (B,Crgb,H,W)
    Returns y (B,Cout,H,W) [and rgb (B,Crgb,H,W) f32 if rgb_style is given].
    """
    B, Cin, H, W = x.shape
    Cout, _, K, _ = weight.shape
    p = (K - 1) // 2                      # 'same' padding, stride=1, dilation=1
    Wp, Hq = W + 2 * p, H + 2 * p
    Cin_pad = _round_up(Cin, 16)          # bf16 sublane tile; aligned tap stacking
    M = H * Wp                            # output length in padded-W flat coords
    M_pad = _round_up(M, 128)             # lane-dense (unmasked) output stores
    Nf_pad = _round_up(max(Hq * Wp, (K - 1) * (Wp + 1) + M_pad), 128)
    fold = (K * K * Cin_pad) <= fold_taps_max

    # One bf16 HBM stream for the activation: zero 'same' pad + channel pad +
    # flat lane pad (junk lanes only ever feed junk output columns).
    xpad = jnp.pad(x.astype(jnp.bfloat16),
                   ((0, 0), (0, Cin_pad - Cin), (p, p), (p, p)))
    xf = jnp.pad(xpad.reshape(B, Cin_pad, Hq * Wp),
                 ((0, 0), (0, 0), (0, Nf_pad - Hq * Wp)))

    wf = weight.astype(jnp.float32)
    scale = style.astype(jnp.float32) + 1.0                       # (B, Cin)
    scale_pad = jnp.pad(scale, ((0, 0), (0, Cin_pad - Cin))).reshape(B, Cin_pad, 1)

    # TODO(synk): cache these weight re-layouts outside the per-step forward.
    if fold:
        wk = jnp.transpose(wf, (0, 2, 3, 1))                      # (Cout,K,K,Cin)
        wk = jnp.pad(wk, ((0, 0), (0, 0), (0, 0), (0, Cin_pad - Cin)))
        wk = wk.reshape(Cout, K * K * Cin_pad).astype(jnp.bfloat16)
        w_spec = pl.BlockSpec((Cout, K * K * Cin_pad), lambda b: (0, 0))
    else:
        wk = jnp.transpose(wf, (2, 3, 0, 1)).reshape(K * K, Cout, Cin)
        wk = jnp.pad(wk, ((0, 0), (0, 0), (0, Cin_pad - Cin))).astype(jnp.bfloat16)
        w_spec = pl.BlockSpec((K * K, Cout, Cin_pad), lambda b: (0, 0, 0))

    inputs = [scale_pad]
    in_specs = [pl.BlockSpec((None, Cin_pad, 1), lambda b: (b, 0, 0))]
    if demod:
        w2 = jnp.sum(wf * wf, axis=(2, 3))                        # (Cout, Cin)
        d = jax.lax.rsqrt(jnp.square(scale) @ w2.T + eps)         # (B, Cout)
        inputs.append(d.reshape(B, Cout, 1))
        in_specs.append(pl.BlockSpec((None, Cout, 1), lambda b: (b, 0, 0)))
    has_noise = noise is not None
    if has_noise:
        nmap = jnp.pad(noise.astype(jnp.float32),
                       ((0, 0), (0, 0), (0, Wp - W))).reshape(B, 1, M)
        nmap = jnp.pad(nmap, ((0, 0), (0, 0), (0, M_pad - M)))
        inputs += [nmap,
                   noise_w.astype(jnp.float32).reshape(Cout, 1),
                   noise_b.astype(jnp.float32).reshape(Cout, 1)]
        in_specs += [pl.BlockSpec((None, 1, M_pad), lambda b: (b, 0, 0)),
                     pl.BlockSpec((Cout, 1), lambda b: (0, 0)),
                     pl.BlockSpec((Cout, 1), lambda b: (0, 0))]
    inputs += [xf, wk]
    in_specs += [pl.BlockSpec((None, Cin_pad, Nf_pad), lambda b: (b, 0, 0)), w_spec]

    fuse_rgb = rgb_style is not None
    has_prev = prev_rgb is not None
    Crgb = 0
    if fuse_rgb:
        Crgb = rgb_weight.shape[0]
        rgb_scale = (rgb_style.astype(jnp.float32) + 1.0).reshape(B, Cout, 1)
        rgb_w = rgb_weight.reshape(Crgb, Cout).astype(jnp.bfloat16)
        inputs += [rgb_scale, rgb_w]
        in_specs += [pl.BlockSpec((None, Cout, 1), lambda b: (b, 0, 0)),
                     pl.BlockSpec((Crgb, Cout), lambda b: (0, 0))]
        if has_prev:
            pr = jnp.pad(prev_rgb.astype(jnp.float32),
                         ((0, 0), (0, 0), (0, 0), (0, Wp - W))).reshape(B, Crgb, M)
            pr = jnp.pad(pr, ((0, 0), (0, 0), (0, M_pad - M)))
            inputs.append(pr)
            in_specs.append(pl.BlockSpec((None, Crgb, M_pad), lambda b: (b, 0, 0)))

    out_shapes = [jax.ShapeDtypeStruct((B, Cout, M_pad), out_dtype)]
    out_specs = [pl.BlockSpec((None, Cout, M_pad), lambda b: (b, 0, 0))]
    if fuse_rgb:
        out_shapes.append(jax.ShapeDtypeStruct((B, Crgb, M_pad), jnp.float32))
        out_specs.append(pl.BlockSpec((None, Crgb, M_pad), lambda b: (b, 0, 0)))

    scratch_shapes = []
    if fold:
        scratch_shapes.append(pltpu.VMEM((K * K * Cin_pad, M_pad), jnp.bfloat16))

    kern = functools.partial(_modconv_kernel, K=K, Wp=Wp, Mlane=M_pad, fold=fold,
                             demod=demod, has_noise=has_noise, act=act,
                             fuse_rgb=fuse_rgb, has_prev=has_prev)

    flops = 2 * B * Cout * K * K * Cin * M
    if fuse_rgb:
        flops += 2 * B * Crgb * Cout * M
    bytes_accessed = int(
        sum(int(np.prod(a.shape)) * np.dtype(a.dtype).itemsize for a in inputs)
        + sum(int(np.prod(s.shape)) * np.dtype(s.dtype).itemsize for s in out_shapes))

    outs = pl.pallas_call(
        kern,
        out_shape=tuple(out_shapes) if fuse_rgb else out_shapes[0],
        grid=(B,),
        in_specs=in_specs,
        out_specs=tuple(out_specs) if fuse_rgb else out_specs[0],
        scratch_shapes=scratch_shapes,
        compiler_params=pltpu.CompilerParams(dimension_semantics=("parallel",)),
        cost_estimate=pl.CostEstimate(flops=int(flops), transcendentals=0,
                                      bytes_accessed=bytes_accessed),
    )(*inputs)

    def _unflat(o):
        return o[:, :, :M].reshape(B, -1, H, Wp)[:, :, :, :W]

    if fuse_rgb:
        y, rgb = outs
        return _unflat(y), _unflat(rgb)
    return _unflat(outs)


def blur(x):
    """kornia-style filter2D with normalized [1,2,1]x[1,2,1] kernel, reflect pad."""
    x = x.astype(jnp.float32)
    B, C, H, W = x.shape
    Wp, Hp = W + 2, H + 2
    M = H * Wp
    M_pad = _round_up(M, 128)
    Nf_pad = _round_up(max(Hp * Wp, M_pad + 2 * Wp + 2), 128)
    xp = jnp.pad(x, ((0, 0), (0, 0), (1, 1), (1, 1)), mode="reflect")
    xf = jnp.pad(xp.reshape(B * C, Hp * Wp), ((0, 0), (0, Nf_pad - Hp * Wp)))
    out = pl.pallas_call(
        functools.partial(_blur_kernel, Wp=Wp, Mlane=M_pad),
        out_shape=jax.ShapeDtypeStruct((B * C, M_pad), jnp.float32),
        grid=(1,),
        in_specs=[pl.BlockSpec((B * C, Nf_pad), lambda i: (0, 0))],
        out_specs=pl.BlockSpec((B * C, M_pad), lambda i: (0, 0)),
    )(xf)
    return out[:, :M].reshape(B, C, H, Wp)[:, :, :, :W]


def upsample_bilinear_2x(x):
    # matches torch nn.Upsample(scale_factor=2, mode='bilinear', align_corners=False)
    # TODO(synk): fuse this fixed 4-tap stencil into the blur / conv1 kernels to
    # avoid one HBM round trip of the upsampled tensor.
    B, C, H, W = x.shape
    return jax.image.resize(x, (B, C, 2 * H, 2 * W), method="bilinear")


def linear(x, w, b):
    return x @ w.T + b


# ----------------------------------------------------------------------------
# GeneratorBlock forward
# ----------------------------------------------------------------------------
def generator_block_forward(params, x, prev_rgb, istyle, inoise, *,
                            upsample=True, upsample_rgb=True):
    if upsample:
        x = upsample_bilinear_2x(x)
    B, _, H, W = x.shape

    # per-pixel scalar noise map n[b,h,w] = inoise[b,w,h,0]; matches the
    # reference slice [:B, :W, :H, :] + permute(0,3,2,1).
    nmap = jnp.transpose(inoise[:B, :W, :H, 0], (0, 2, 1)).astype(jnp.float32)

    style1 = linear(istyle, params["style1_w"], params["style1_b"])     # (B, Cin)
    x = mod_conv2d_fused(x, style1, params["conv1_w"], demod=True,
                         noise=nmap, noise_w=params["noise1_w"][:, 0],
                         noise_b=params["noise1_b"], act=True,
                         out_dtype=jnp.bfloat16)

    style2 = linear(istyle, params["style2_w"], params["style2_b"])     # (B, F)
    rgb_style = linear(istyle, params["rgb_style_w"], params["rgb_style_b"])
    # conv2 fused with the 1x1 modulated RGB conv + prev_rgb residual.
    x, rgb = mod_conv2d_fused(x, style2, params["conv2_w"], demod=True,
                              noise=nmap, noise_w=params["noise2_w"][:, 0],
                              noise_b=params["noise2_b"], act=True,
                              out_dtype=jnp.bfloat16,
                              rgb_style=rgb_style,
                              rgb_weight=params["rgb_conv_w"],
                              prev_rgb=prev_rgb)

    if upsample_rgb:
        rgb = upsample_bilinear_2x(rgb)
        rgb = blur(rgb)
    return x.astype(jnp.float32), rgb


# ----------------------------------------------------------------------------
# Deterministic parameter init
# ----------------------------------------------------------------------------
def init_params(key, latent_dim, input_channels, filters, rgba=False):
    out_rgb = 4 if rgba else 3
    ks = jax.random.split(key, 12)

    def lin(kw, kb, out_f, in_f):
        lim = 1.0 / np.sqrt(in_f)
        w = jax.random.uniform(kw, (out_f, in_f), jnp.float32, -lim, lim)
        b = jax.random.uniform(kb, (out_f,), jnp.float32, -lim, lim)
        return w, b

    def conv_w(k, out_c, in_c, kk):
        fan_in = in_c * kk * kk
        std = np.sqrt(2.0 / fan_in)  # kaiming_normal, a=0, fan_in, leaky_relu
        return jax.random.normal(k, (out_c, in_c, kk, kk), jnp.float32) * std

    p = {}
    p["style1_w"], p["style1_b"] = lin(ks[0], ks[1], input_channels, latent_dim)
    p["noise1_w"], p["noise1_b"] = lin(ks[2], ks[3], filters, 1)
    p["conv1_w"] = conv_w(ks[4], filters, input_channels, 3)
    p["style2_w"], p["style2_b"] = lin(ks[5], ks[6], filters, latent_dim)
    p["noise2_w"], p["noise2_b"] = lin(ks[7], ks[8], filters, 1)
    p["conv2_w"] = conv_w(ks[9], filters, filters, 3)
    p["rgb_style_w"], p["rgb_style_b"] = lin(ks[10], ks[11], filters, latent_dim)
    p["rgb_conv_w"] = conv_w(jax.random.fold_in(key, 99), out_rgb, filters, 1)
    return p


# ----------------------------------------------------------------------------
if __name__ == "__main__":
    latent_dim = 32
    input_channels = 4
    filters = 8
    B = 2
    Hin = Win = 8          # input resolution; upsampled to 16x16 inside the block

    key = jax.random.PRNGKey(0)
    k_p, k_x, k_rgb, k_sty, k_noi = jax.random.split(key, 5)
    params = init_params(k_p, latent_dim, input_channels, filters)

    x = jax.random.normal(k_x, (B, input_channels, Hin, Win), jnp.float32)
    prev_rgb = jax.random.normal(k_rgb, (B, 3, 2 * Hin, 2 * Win), jnp.float32)
    istyle = jax.random.normal(k_sty, (B, latent_dim), jnp.float32)
    inoise = jax.random.uniform(k_noi, (B, 2 * Hin, 2 * Win, 1), jnp.float32)

    fwd = jax.jit(functools.partial(generator_block_forward,
                                    upsample=True, upsample_rgb=True))
    x_out, rgb_out = fwd(params, x, prev_rgb, istyle, inoise)
    jax.block_until_ready((x_out, rgb_out))

    assert x_out.shape == (B, filters, 2 * Hin, 2 * Win)
    assert rgb_out.shape == (B, 3, 4 * Hin, 4 * Win)
    assert bool(jnp.all(jnp.isfinite(x_out))) and bool(jnp.all(jnp.isfinite(rgb_out)))
    print("KERNEL_OK")
</pallas_src>

<mosaic_0001>
module attributes {stable_mosaic.version = 11 : i64} {
  func.func @_modconv_kernel(%arg0: i32, %arg1: memref<1x16x1xf32, #tpu.memory_space<vmem>>, %arg2: memref<1x8x1xf32, #tpu.memory_space<vmem>>, %arg3: memref<1x1x384xf32, #tpu.memory_space<vmem>>, %arg4: memref<8x1xf32, #tpu.memory_space<vmem>>, %arg5: memref<8x1xf32, #tpu.memory_space<vmem>>, %arg6: memref<1x16x512xbf16, #tpu.memory_space<vmem>>, %arg7: memref<8x144xbf16, #tpu.memory_space<vmem>>, %arg8: memref<1x8x384xbf16, #tpu.memory_space<vmem>>, %arg9: memref<144x384xbf16, #tpu.memory_space<vmem>>) attributes {dimension_semantics = [#tpu.dimension_semantics<parallel>], iteration_bounds = array<i64: 2>, scalar_prefetch = 0 : i64, scratch_operands = 1 : i64, tpu.core_type = #tpu.core_type<tc>, window_params = [{transform_indices = @transform_0, window_bounds = array<i64: 1, 16, 1>}, {transform_indices = @transform_1, window_bounds = array<i64: 1, 8, 1>}, {transform_indices = @transform_2, window_bounds = array<i64: 1, 1, 384>}, {pipeline_mode = #tpu.pipeline_mode<synchronous>, transform_indices = @transform_3, window_bounds = array<i64: 8, 1>}, {pipeline_mode = #tpu.pipeline_mode<synchronous>, transform_indices = @transform_4, window_bounds = array<i64: 8, 1>}, {transform_indices = @transform_5, window_bounds = array<i64: 1, 16, 512>}, {pipeline_mode = #tpu.pipeline_mode<synchronous>, transform_indices = @transform_6, window_bounds = array<i64: 8, 144>}, {transform_indices = @transform_7, window_bounds = array<i64: 1, 8, 384>}]} {
    %c0 = arith.constant 0 : index
    %c0_0 = arith.constant 0 : index
    %c0_1 = arith.constant 0 : index
    %0 = vector.load %arg6[%c0, %c0_0, %c0_1] : memref<1x16x512xbf16, #tpu.memory_space<vmem>>, vector<1x16x512xbf16>
    %1 = vector.shape_cast %0 : vector<1x16x512xbf16> to vector<16x512xbf16>
    %c0_2 = arith.constant 0 : index
    %c0_3 = arith.constant 0 : index
    %c0_4 = arith.constant 0 : index
    %2 = vector.load %arg1[%c0_2, %c0_3, %c0_4] : memref<1x16x1xf32, #tpu.memory_space<vmem>>, vector<1x16x1xf32>
    %3 = vector.shape_cast %2 : vector<1x16x1xf32> to vector<16x1xf32>
    %4 = arith.truncf %3 : vector<16x1xf32> to vector<16x1xbf16>
    %5 = vector.broadcast %4 : vector<16x1xbf16> to vector<16x512xbf16>
    %6 = arith.mulf %1, %5 : vector<16x512xbf16>
    %7 = vector.extract_strided_slice %6 {offsets = [0, 0], sizes = [16, 384], strides = [1, 1]} : vector<16x512xbf16> to vector<16x384xbf16>
    %c0_5 = arith.constant 0 : index
    %c0_6 = arith.constant 0 : index
    %8 = vector.load %arg9[%c0_5, %c0_6] : memref<144x384xbf16, #tpu.memory_space<vmem>>, vector<16x384xbf16>
    tpu.vector_store %arg9[%c0_5, %c0_6], %7 {strides = array<i32>} : memref<144x384xbf16, #tpu.memory_space<vmem>>, vector<16x384xbf16>,
    %9 = vector.extract_strided_slice %6 {offsets = [0, 1], sizes = [16, 384], strides = [1, 1]} : vector<16x512xbf16> to vector<16x384xbf16>
    %c16 = arith.constant 16 : index
    %c0_7 = arith.constant 0 : index
    %10 = vector.load %arg9[%c16, %c0_7] : memref<144x384xbf16, #tpu.memory_space<vmem>>, vector<16x384xbf16>
    tpu.vector_store %arg9[%c16, %c0_7], %9 {strides = array<i32>} : memref<144x384xbf16, #tpu.memory_space<vmem>>, vector<16x384xbf16>,
    %11 = vector.extract_strided_slice %6 {offsets = [0, 2], sizes = [16, 384], strides = [1, 1]} : vector<16x512xbf16> to vector<16x384xbf16>
    %c32 = arith.constant 32 : index
    %c0_8 = arith.constant 0 : index
    %12 = vector.load %arg9[%c32, %c0_8] : memref<144x384xbf16, #tpu.memory_space<vmem>>, vector<16x384xbf16>
    tpu.vector_store %arg9[%c32, %c0_8], %11 {strides = array<i32>} : memref<144x384xbf16, #tpu.memory_space<vmem>>, vector<16x384xbf16>,
    %13 = vector.extract_strided_slice %6 {offsets = [0, 18], sizes = [16, 384], strides = [1, 1]} : vector<16x512xbf16> to vector<16x384xbf16>
    %c48 = arith.constant 48 : index
    %c0_9 = arith.constant 0 : index
    %14 = vector.load %arg9[%c48, %c0_9] : memref<144x384xbf16, #tpu.memory_space<vmem>>, vector<16x384xbf16>
    tpu.vector_store %arg9[%c48, %c0_9], %13 {strides = array<i32>} : memref<144x384xbf16, #tpu.memory_space<vmem>>, vector<16x384xbf16>,
    %15 = vector.extract_strided_slice %6 {offsets = [0, 19], sizes = [16, 384], strides = [1, 1]} : vector<16x512xbf16> to vector<16x384xbf16>
    %c64 = arith.constant 64 : index
    %c0_10 = arith.constant 0 : index
    %16 = vector.load %arg9[%c64, %c0_10] : memref<144x384xbf16, #tpu.memory_space<vmem>>, vector<16x384xbf16>
    tpu.vector_store %arg9[%c64, %c0_10], %15 {strides = array<i32>} : memref<144x384xbf16, #tpu.memory_space<vmem>>, vector<16x384xbf16>,
    %17 = vector.extract_strided_slice %6 {offsets = [0, 20], sizes = [16, 384], strides = [1, 1]} : vector<16x512xbf16> to vector<16x384xbf16>
    %c80 = arith.constant 80 : index
    %c0_11 = arith.constant 0 : index
    %18 = vector.load %arg9[%c80, %c0_11] : memref<144x384xbf16, #tpu.memory_space<vmem>>, vector<16x384xbf16>
    tpu.vector_store %arg9[%c80, %c0_11], %17 {strides = array<i32>} : memref<144x384xbf16, #tpu.memory_space<vmem>>, vector<16x384xbf16>,
    %19 = vector.extract_strided_slice %6 {offsets = [0, 36], sizes = [16, 384], strides = [1, 1]} : vector<16x512xbf16> to vector<16x384xbf16>
    %c96 = arith.constant 96 : index
    %c0_12 = arith.constant 0 : index
    %20 = vector.load %arg9[%c96, %c0_12] : memref<144x384xbf16, #tpu.memory_space<vmem>>, vector<16x384xbf16>
    tpu.vector_store %arg9[%c96, %c0_12], %19 {strides = array<i32>} : memref<144x384xbf16, #tpu.memory_space<vmem>>, vector<16x384xbf16>,
    %21 = vector.extract_strided_slice %6 {offsets = [0, 37], sizes = [16, 384], strides = [1, 1]} : vector<16x512xbf16> to vector<16x384xbf16>
    %c112 = arith.constant 112 : index
    %c0_13 = arith.constant 0 : index
    %22 = vector.load %arg9[%c112, %c0_13] : memref<144x384xbf16, #tpu.memory_space<vmem>>, vector<16x384xbf16>
    tpu.vector_store %arg9[%c112, %c0_13], %21 {strides = array<i32>} : memref<144x384xbf16, #tpu.memory_space<vmem>>, vector<16x384xbf16>,
    %23 = vector.extract_strided_slice %6 {offsets = [0, 38], sizes = [16, 384], strides = [1, 1]} : vector<16x512xbf16> to vector<16x384xbf16>
    %c128 = arith.constant 128 : index
    %c0_14 = arith.constant 0 : index
    %24 = vector.load %arg9[%c128, %c0_14] : memref<144x384xbf16, #tpu.memory_space<vmem>>, vector<16x384xbf16>
    tpu.vector_store %arg9[%c128, %c0_14], %23 {strides = array<i32>} : memref<144x384xbf16, #tpu.memory_space<vmem>>, vector<16x384xbf16>,
    %c0_15 = arith.constant 0 : index
    %c0_16 = arith.constant 0 : index
    %25 = vector.load %arg7[%c0_15, %c0_16] : memref<8x144xbf16, #tpu.memory_space<vmem>>, vector<8x144xbf16>
    %c0_17 = arith.constant 0 : index
    %c0_18 = arith.constant 0 : index
    %26 = vector.load %arg9[%c0_17, %c0_18] : memref<144x384xbf16, #tpu.memory_space<vmem>>, vector<144x384xbf16>
    %cst = arith.constant dense<0.000000e+00> : vector<8x384xf32>
    %27 = tpu.matmul %25, %26, %cst {dimension_numbers = #tpu.dot_dimension_numbers<[1], [0], [0], [1], [0, 0, 1, 1], [], []>} : vector<8x144xbf16>, vector<144x384xbf16>, vector<8x384xf32> -> vector<8x384xf32>
    %c0_19 = arith.constant 0 : index
    %c0_20 = arith.constant 0 : index
    %c0_21 = arith.constant 0 : index
    %28 = vector.load %arg2[%c0_19, %c0_20, %c0_21] : memref<1x8x1xf32, #tpu.memory_space<vmem>>, vector<1x8x1xf32>
    %29 = vector.shape_cast %28 : vector<1x8x1xf32> to vector<8x1xf32>
    %30 = vector.broadcast %29 : vector<8x1xf32> to vector<8x384xf32>
    %31 = arith.mulf %27, %30 : vector<8x384xf32>
    %c0_22 = arith.constant 0 : index
    %c0_23 = arith.constant 0 : index
    %c0_24 = arith.constant 0 : index
    %32 = vector.load %arg3[%c0_22, %c0_23, %c0_24] : memref<1x1x384xf32, #tpu.memory_space<vmem>>, vector<1x1x384xf32>
    %33 = vector.shape_cast %32 : vector<1x1x384xf32> to vector<1x384xf32>
    %c0_25 = arith.constant 0 : index
    %c0_26 = arith.constant 0 : index
    %34 = vector.load %arg4[%c0_25, %c0_26] : memref<8x1xf32, #tpu.memory_space<vmem>>, vector<8x1xf32>
    %35 = vector.broadcast %33 : vector<1x384xf32> to vector<8x384xf32>
    %36 = vector.broadcast %34 : vector<8x1xf32> to vector<8x384xf32>
    %37 = arith.mulf %35, %36 : vector<8x384xf32>
    %38 = arith.addf %31, %37 : vector<8x384xf32>
    %c0_27 = arith.constant 0 : index
    %c0_28 = arith.constant 0 : index
    %39 = vector.load %arg5[%c0_27, %c0_28] : memref<8x1xf32, #tpu.memory_space<vmem>>, vector<8x1xf32>
    %40 = vector.broadcast %39 : vector<8x1xf32> to vector<8x384xf32>
    %41 = arith.addf %38, %40 : vector<8x384xf32>
    %cst_29 = arith.constant 0.000000e+00 : f32
    %42 = vector.broadcast %cst_29 : f32 to vector<8x384xf32>
    %43 = arith.cmpf oge, %41, %42 : vector<8x384xf32>
    %cst_30 = arith.constant 2.000000e-01 : f32
    %44 = vector.broadcast %cst_30 : f32 to vector<8x384xf32>
    %45 = arith.mulf %41, %44 : vector<8x384xf32>
    %46 = arith.select %43, %41, %45 : vector<8x384xi1>, vector<8x384xf32>
    %47 = arith.truncf %46 : vector<8x384xf32> to vector<8x384xbf16>
    %c0_31 = arith.constant 0 : index
    %c0_32 = arith.constant 0 : index
    %c0_33 = arith.constant 0 : index
    %48 = vector.load %arg8[%c0_31, %c0_32, %c0_33] : memref<1x8x384xbf16, #tpu.memory_space<vmem>>, vector<1x8x384xbf16>
    %49 = vector.shape_cast %48 : vector<1x8x384xbf16> to vector<8x384xbf16>
    %50 = vector.shape_cast %47 : vector<8x384xbf16> to vector<1x8x384xbf16>
    tpu.vector_store %arg8[%c0_31, %c0_32, %c0_33], %50 {strides = array<i32>} : memref<1x8x384xbf16, #tpu.memory_space<vmem>>, vector<1x8x384xbf16>,
    return
  }
  func.func @transform_0(%arg0: i32) -> (i32, i32, i32) {
    %c0_i32 = arith.constant 0 : i32
    %c0_i32_0 = arith.constant 0 : i32
    %c0_i32_1 = arith.constant 0 : i32
    return %arg0, %c0_i32, %c0_i32_0 : i32, i32, i32
  }
  func.func @transform_1(%arg0: i32) -> (i32, i32, i32) {
    %c0_i32 = arith.constant 0 : i32
    %c0_i32_0 = arith.constant 0 : i32
    %c0_i32_1 = arith.constant 0 : i32
    return %arg0, %c0_i32, %c0_i32_0 : i32, i32, i32
  }
  func.func @transform_2(%arg0: i32) -> (i32, i32, i32) {
    %c0_i32 = arith.constant 0 : i32
    %c0_i32_0 = arith.constant 0 : i32
    %c0_i32_1 = arith.constant 0 : i32
    return %arg0, %c0_i32, %c0_i32_0 : i32, i32, i32
  }
  func.func @transform_3(%arg0: i32) -> (i32, i32) {
    %c0_i32 = arith.constant 0 : i32
    %c0_i32_0 = arith.constant 0 : i32
    %c0_i32_1 = arith.constant 0 : i32
    return %c0_i32, %c0_i32_0 : i32, i32
  }
  func.func @transform_4(%arg0: i32) -> (i32, i32) {
    %c0_i32 = arith.constant 0 : i32
    %c0_i32_0 = arith.constant 0 : i32
    %c0_i32_1 = arith.constant 0 : i32
    return %c0_i32, %c0_i32_0 : i32, i32
  }
  func.func @transform_5(%arg0: i32) -> (i32, i32, i32) {
    %c0_i32 = arith.constant 0 : i32
    %c0_i32_0 = arith.constant 0 : i32
    %c0_i32_1 = arith.constant 0 : i32
    return %arg0, %c0_i32, %c0_i32_0 : i32, i32, i32
  }
  func.func @transform_6(%arg0: i32) -> (i32, i32) {
    %c0_i32 = arith.constant 0 : i32
    %c0_i32_0 = arith.constant 0 : i32
    %c0_i32_1 = arith.constant 0 : i32
    return %c0_i32, %c0_i32_0 : i32, i32
  }
  func.func @transform_7(%arg0: i32) -> (i32, i32, i32) {
    %c0_i32 = arith.constant 0 : i32
    %c0_i32_0 = arith.constant 0 : i32
    %c0_i32_1 = arith.constant 0 : i32
    return %arg0, %c0_i32, %c0_i32_0 : i32, i32, i32
  }
}

module attributes {stable_mosaic.version = 11 : i64} {
  func.func @_modconv_kernel(%arg0: i32, %arg1: memref<1x16x1xf32, #tpu.memory_space<vmem>>, %arg2: memref<1x8x1xf32, #tpu.memory_space<vmem>>, %arg3: memref<1x1x384xf32, #tpu.memory_space<vmem>>, %arg4: memref<8x1xf32, #tpu.memory_space<vmem>>, %arg5: memref<8x1xf32, #tpu.memory_space<vmem>>, %arg6: memref<1x16x512xbf16, #tpu.memory_space<vmem>>, %arg7: memref<8x144xbf16, #tpu.memory_space<vmem>>, %arg8: memref<1x8x1xf32, #tpu.memory_space<vmem>>, %arg9: memref<3x8xbf16, #tpu.memory_space<vmem>>, %arg10: memref<1x3x384xf32, #tpu.memory_space<vmem>>, %arg11: memref<1x8x384xbf16, #tpu.memory_space<vmem>>, %arg12: memref<1x3x384xf32, #tpu.memory_space<vmem>>, %arg13: memref<144x384xbf16, #tpu.memory_space<vmem>>) attributes {dimension_semantics = [#tpu.dimension_semantics<parallel>], iteration_bounds = array<i64: 2>, scalar_prefetch = 0 : i64, scratch_operands = 1 : i64, tpu.core_type = #tpu.core_type<tc>, window_params = [{transform_indices = @transform_0, window_bounds = array<i64: 1, 16, 1>}, {transform_indices = @transform_1, window_bounds = array<i64: 1, 8, 1>}, {transform_indices = @transform_2, window_bounds = array<i64: 1, 1, 384>}, {pipeline_mode = #tpu.pipeline_mode<synchronous>, transform_indices = @transform_3, window_bounds = array<i64: 8, 1>}, {pipeline_mode = #tpu.pipeline_mode<synchronous>, transform_indices = @transform_4, window_bounds = array<i64: 8, 1>}, {transform_indices = @transform_5, window_bounds = array<i64: 1, 16, 512>}, {pipeline_mode = #tpu.pipeline_mode<synchronous>, transform_indices = @transform_6, window_bounds = array<i64: 8, 144>}, {transform_indices = @transform_7, window_bounds = array<i64: 1, 8, 1>}, {pipeline_mode = #tpu.pipeline_mode<synchronous>, transform_indices = @transform_8, window_bounds = array<i64: 3, 8>}, {transform_indices = @transform_9, window_bounds = array<i64: 1, 3, 384>}, {transform_indices = @transform_10, window_bounds = array<i64: 1, 8, 384>}, {transform_indices = @transform_11, window_bounds = array<i64: 1, 3, 384>}]} {
    %c0 = arith.constant 0 : index
    %c0_0 = arith.constant 0 : index
    %c0_1 = arith.constant 0 : index
    %0 = vector.load %arg6[%c0, %c0_0, %c0_1] : memref<1x16x512xbf16, #tpu.memory_space<vmem>>, vector<1x16x512xbf16>
    %1 = vector.shape_cast %0 : vector<1x16x512xbf16> to vector<16x512xbf16>
    %c0_2 = arith.constant 0 : index
    %c0_3 = arith.constant 0 : index
    %c0_4 = arith.constant 0 : index
    %2 = vector.load %arg1[%c0_2, %c0_3, %c0_4] : memref<1x16x1xf32, #tpu.memory_space<vmem>>, vector<1x16x1xf32>
    %3 = vector.shape_cast %2 : vector<1x16x1xf32> to vector<16x1xf32>
    %4 = arith.truncf %3 : vector<16x1xf32> to vector<16x1xbf16>
    %5 = vector.broadcast %4 : vector<16x1xbf16> to vector<16x512xbf16>
    %6 = arith.mulf %1, %5 : vector<16x512xbf16>
    %7 = vector.extract_strided_slice %6 {offsets = [0, 0], sizes = [16, 384], strides = [1, 1]} : vector<16x512xbf16> to vector<16x384xbf16>
    %c0_5 = arith.constant 0 : index
    %c0_6 = arith.constant 0 : index
    %8 = vector.load %arg13[%c0_5, %c0_6] : memref<144x384xbf16, #tpu.memory_space<vmem>>, vector<16x384xbf16>
    tpu.vector_store %arg13[%c0_5, %c0_6], %7 {strides = array<i32>} : memref<144x384xbf16, #tpu.memory_space<vmem>>, vector<16x384xbf16>,
    %9 = vector.extract_strided_slice %6 {offsets = [0, 1], sizes = [16, 384], strides = [1, 1]} : vector<16x512xbf16> to vector<16x384xbf16>
    %c16 = arith.constant 16 : index
    %c0_7 = arith.constant 0 : index
    %10 = vector.load %arg13[%c16, %c0_7] : memref<144x384xbf16, #tpu.memory_space<vmem>>, vector<16x384xbf16>
    tpu.vector_store %arg13[%c16, %c0_7], %9 {strides = array<i32>} : memref<144x384xbf16, #tpu.memory_space<vmem>>, vector<16x384xbf16>,
    %11 = vector.extract_strided_slice %6 {offsets = [0, 2], sizes = [16, 384], strides = [1, 1]} : vector<16x512xbf16> to vector<16x384xbf16>
    %c32 = arith.constant 32 : index
    %c0_8 = arith.constant 0 : index
    %12 = vector.load %arg13[%c32, %c0_8] : memref<144x384xbf16, #tpu.memory_space<vmem>>, vector<16x384xbf16>
    tpu.vector_store %arg13[%c32, %c0_8], %11 {strides = array<i32>} : memref<144x384xbf16, #tpu.memory_space<vmem>>, vector<16x384xbf16>,
    %13 = vector.extract_strided_slice %6 {offsets = [0, 18], sizes = [16, 384], strides = [1, 1]} : vector<16x512xbf16> to vector<16x384xbf16>
    %c48 = arith.constant 48 : index
    %c0_9 = arith.constant 0 : index
    %14 = vector.load %arg13[%c48, %c0_9] : memref<144x384xbf16, #tpu.memory_space<vmem>>, vector<16x384xbf16>
    tpu.vector_store %arg13[%c48, %c0_9], %13 {strides = array<i32>} : memref<144x384xbf16, #tpu.memory_space<vmem>>, vector<16x384xbf16>,
    %15 = vector.extract_strided_slice %6 {offsets = [0, 19], sizes = [16, 384], strides = [1, 1]} : vector<16x512xbf16> to vector<16x384xbf16>
    %c64 = arith.constant 64 : index
    %c0_10 = arith.constant 0 : index
    %16 = vector.load %arg13[%c64, %c0_10] : memref<144x384xbf16, #tpu.memory_space<vmem>>, vector<16x384xbf16>
    tpu.vector_store %arg13[%c64, %c0_10], %15 {strides = array<i32>} : memref<144x384xbf16, #tpu.memory_space<vmem>>, vector<16x384xbf16>,
    %17 = vector.extract_strided_slice %6 {offsets = [0, 20], sizes = [16, 384], strides = [1, 1]} : vector<16x512xbf16> to vector<16x384xbf16>
    %c80 = arith.constant 80 : index
    %c0_11 = arith.constant 0 : index
    %18 = vector.load %arg13[%c80, %c0_11] : memref<144x384xbf16, #tpu.memory_space<vmem>>, vector<16x384xbf16>
    tpu.vector_store %arg13[%c80, %c0_11], %17 {strides = array<i32>} : memref<144x384xbf16, #tpu.memory_space<vmem>>, vector<16x384xbf16>,
    %19 = vector.extract_strided_slice %6 {offsets = [0, 36], sizes = [16, 384], strides = [1, 1]} : vector<16x512xbf16> to vector<16x384xbf16>
    %c96 = arith.constant 96 : index
    %c0_12 = arith.constant 0 : index
    %20 = vector.load %arg13[%c96, %c0_12] : memref<144x384xbf16, #tpu.memory_space<vmem>>, vector<16x384xbf16>
    tpu.vector_store %arg13[%c96, %c0_12], %19 {strides = array<i32>} : memref<144x384xbf16, #tpu.memory_space<vmem>>, vector<16x384xbf16>,
    %21 = vector.extract_strided_slice %6 {offsets = [0, 37], sizes = [16, 384], strides = [1, 1]} : vector<16x512xbf16> to vector<16x384xbf16>
    %c112 = arith.constant 112 : index
    %c0_13 = arith.constant 0 : index
    %22 = vector.load %arg13[%c112, %c0_13] : memref<144x384xbf16, #tpu.memory_space<vmem>>, vector<16x384xbf16>
    tpu.vector_store %arg13[%c112, %c0_13], %21 {strides = array<i32>} : memref<144x384xbf16, #tpu.memory_space<vmem>>, vector<16x384xbf16>,
    %23 = vector.extract_strided_slice %6 {offsets = [0, 38], sizes = [16, 384], strides = [1, 1]} : vector<16x512xbf16> to vector<16x384xbf16>
    %c128 = arith.constant 128 : index
    %c0_14 = arith.constant 0 : index
    %24 = vector.load %arg13[%c128, %c0_14] : memref<144x384xbf16, #tpu.memory_space<vmem>>, vector<16x384xbf16>
    tpu.vector_store %arg13[%c128, %c0_14], %23 {strides = array<i32>} : memref<144x384xbf16, #tpu.memory_space<vmem>>, vector<16x384xbf16>,
    %c0_15 = arith.constant 0 : index
    %c0_16 = arith.constant 0 : index
    %25 = vector.load %arg7[%c0_15, %c0_16] : memref<8x144xbf16, #tpu.memory_space<vmem>>, vector<8x144xbf16>
    %c0_17 = arith.constant 0 : index
    %c0_18 = arith.constant 0 : index
    %26 = vector.load %arg13[%c0_17, %c0_18] : memref<144x384xbf16, #tpu.memory_space<vmem>>, vector<144x384xbf16>
    %cst = arith.constant dense<0.000000e+00> : vector<8x384xf32>
    %27 = tpu.matmul %25, %26, %cst {dimension_numbers = #tpu.dot_dimension_numbers<[1], [0], [0], [1], [0, 0, 1, 1], [], []>} : vector<8x144xbf16>, vector<144x384xbf16>, vector<8x384xf32> -> vector<8x384xf32>
    %c0_19 = arith.constant 0 : index
    %c0_20 = arith.constant 0 : index
    %c0_21 = arith.constant 0 : index
    %28 = vector.load %arg2[%c0_19, %c0_20, %c0_21] : memref<1x8x1xf32, #tpu.memory_space<vmem>>, vector<1x8x1xf32>
    %29 = vector.shape_cast %28 : vector<1x8x1xf32> to vector<8x1xf32>
    %30 = vector.broadcast %29 : vector<8x1xf32> to vector<8x384xf32>
    %31 = arith.mulf %27, %30 : vector<8x384xf32>
    %c0_22 = arith.constant 0 : index
    %c0_23 = arith.constant 0 : index
    %c0_24 = arith.constant 0 : index
    %32 = vector.load %arg3[%c0_22, %c0_23, %c0_24] : memref<1x1x384xf32, #tpu.memory_space<vmem>>, vector<1x1x384xf32>
    %33 = vector.shape_cast %32 : vector<1x1x384xf32> to vector<1x384xf32>
    %c0_25 = arith.constant 0 : index
    %c0_26 = arith.constant 0 : index
    %34 = vector.load %arg4[%c0_25, %c0_26] : memref<8x1xf32, #tpu.memory_space<vmem>>, vector<8x1xf32>
    %35 = vector.broadcast %33 : vector<1x384xf32> to vector<8x384xf32>
    %36 = vector.broadcast %34 : vector<8x1xf32> to vector<8x384xf32>
    %37 = arith.mulf %35, %36 : vector<8x384xf32>
    %38 = arith.addf %31, %37 : vector<8x384xf32>
    %c0_27 = arith.constant 0 : index
    %c0_28 = arith.constant 0 : index
    %39 = vector.load %arg5[%c0_27, %c0_28] : memref<8x1xf32, #tpu.memory_space<vmem>>, vector<8x1xf32>
    %40 = vector.broadcast %39 : vector<8x1xf32> to vector<8x384xf32>
    %41 = arith.addf %38, %40 : vector<8x384xf32>
    %cst_29 = arith.constant 0.000000e+00 : f32
    %42 = vector.broadcast %cst_29 : f32 to vector<8x384xf32>
    %43 = arith.cmpf oge, %41, %42 : vector<8x384xf32>
    %cst_30 = arith.constant 2.000000e-01 : f32
    %44 = vector.broadcast %cst_30 : f32 to vector<8x384xf32>
    %45 = arith.mulf %41, %44 : vector<8x384xf32>
    %46 = arith.select %43, %41, %45 : vector<8x384xi1>, vector<8x384xf32>
    %47 = arith.truncf %46 : vector<8x384xf32> to vector<8x384xbf16>
    %c0_31 = arith.constant 0 : index
    %c0_32 = arith.constant 0 : index
    %c0_33 = arith.constant 0 : index
    %48 = vector.load %arg11[%c0_31, %c0_32, %c0_33] : memref<1x8x384xbf16, #tpu.memory_space<vmem>>, vector<1x8x384xbf16>
    %49 = vector.shape_cast %48 : vector<1x8x384xbf16> to vector<8x384xbf16>
    %50 = vector.shape_cast %47 : vector<8x384xbf16> to vector<1x8x384xbf16>
    tpu.vector_store %arg11[%c0_31, %c0_32, %c0_33], %50 {strides = array<i32>} : memref<1x8x384xbf16, #tpu.memory_space<vmem>>, vector<1x8x384xbf16>,
    %c0_34 = arith.constant 0 : index
    %c0_35 = arith.constant 0 : index
    %c0_36 = arith.constant 0 : index
    %51 = vector.load %arg8[%c0_34, %c0_35, %c0_36] : memref<1x8x1xf32, #tpu.memory_space<vmem>>, vector<1x8x1xf32>
    %52 = vector.shape_cast %51 : vector<1x8x1xf32> to vector<8x1xf32>
    %53 = vector.broadcast %52 : vector<8x1xf32> to vector<8x384xf32>
    %54 = arith.mulf %46, %53 : vector<8x384xf32>
    %55 = arith.truncf %54 : vector<8x384xf32> to vector<8x384xbf16>
    %c0_37 = arith.constant 0 : index
    %c0_38 = arith.constant 0 : index
    %56 = vector.load %arg9[%c0_37, %c0_38] : memref<3x8xbf16, #tpu.memory_space<vmem>>, vector<3x8xbf16>
    %cst_39 = arith.constant dense<0.000000e+00> : vector<3x384xf32>
    %57 = tpu.matmul %56, %55, %cst_39 {dimension_numbers = #tpu.dot_dimension_numbers<[1], [0], [0], [1], [0, 0, 1, 1], [], []>} : vector<3x8xbf16>, vector<8x384xbf16>, vector<3x384xf32> -> vector<3x384xf32>
    %c0_40 = arith.constant 0 : index
    %c0_41 = arith.constant 0 : index
    %c0_42 = arith.constant 0 : index
    %58 = vector.load %arg10[%c0_40, %c0_41, %c0_42] : memref<1x3x384xf32, #tpu.memory_space<vmem>>, vector<1x3x384xf32>
    %59 = vector.shape_cast %58 : vector<1x3x384xf32> to vector<3x384xf32>
    %60 = arith.addf %57, %59 : vector<3x384xf32>
    %c0_43 = arith.constant 0 : index
    %c0_44 = arith.constant 0 : index
    %c0_45 = arith.constant 0 : index
    %61 = vector.load %arg12[%c0_43, %c0_44, %c0_45] : memref<1x3x384xf32, #tpu.memory_space<vmem>>, vector<1x3x384xf32>
    %62 = vector.shape_cast %61 : vector<1x3x384xf32> to vector<3x384xf32>
    %63 = vector.shape_cast %60 : vector<3x384xf32> to vector<1x3x384xf32>
    tpu.vector_store %arg12[%c0_43, %c0_44, %c0_45], %63 {strides = array<i32>} : memref<1x3x384xf32, #tpu.memory_space<vmem>>, vector<1x3x384xf32>,
    return
  }
  func.func @transform_0(%arg0: i32) -> (i32, i32, i32) {
    %c0_i32 = arith.constant 0 : i32
    %c0_i32_0 = arith.constant 0 : i32
    %c0_i32_1 = arith.constant 0 : i32
    return %arg0, %c0_i32, %c0_i32_0 : i32, i32, i32
  }
  func.func @transform_1(%arg0: i32) -> (i32, i32, i32) {
    %c0_i32 = arith.constant 0 : i32
    %c0_i32_0 = arith.constant 0 : i32
    %c0_i32_1 = arith.constant 0 : i32
    return %arg0, %c0_i32, %c0_i32_0 : i32, i32, i32
  }
  func.func @transform_2(%arg0: i32) -> (i32, i32, i32) {
    %c0_i32 = arith.constant 0 : i32
    %c0_i32_0 = arith.constant 0 : i32
    %c0_i32_1 = arith.constant 0 : i32
    return %arg0, %c0_i32, %c0_i32_0 : i32, i32, i32
  }
  func.func @transform_3(%arg0: i32) -> (i32, i32) {
    %c0_i32 = arith.constant 0 : i32
    %c0_i32_0 = arith.constant 0 : i32
    %c0_i32_1 = arith.constant 0 : i32
    return %c0_i32, %c0_i32_0 : i32, i32
  }
  func.func @transform_4(%arg0: i32) -> (i32, i32) {
    %c0_i32 = arith.constant 0 : i32
    %c0_i32_0 = arith.constant 0 : i32
    %c0_i32_1 = arith.constant 0 : i32
    return %c0_i32, %c0_i32_0 : i32, i32
  }
  func.func @transform_5(%arg0: i32) -> (i32, i32, i32) {
    %c0_i32 = arith.constant 0 : i32
    %c0_i32_0 = arith.constant 0 : i32
    %c0_i32_1 = arith.constant 0 : i32
    return %arg0, %c0_i32, %c0_i32_0 : i32, i32, i32
  }
  func.func @transform_6(%arg0: i32) -> (i32, i32) {
    %c0_i32 = arith.constant 0 : i32
    %c0_i32_0 = arith.constant 0 : i32
    %c0_i32_1 = arith.constant 0 : i32
    return %c0_i32, %c0_i32_0 : i32, i32
  }
  func.func @transform_7(%arg0: i32) -> (i32, i32, i32) {
    %c0_i32 = arith.constant 0 : i32
    %c0_i32_0 = arith.constant 0 : i32
    %c0_i32_1 = arith.constant 0 : i32
    return %arg0, %c0_i32, %c0_i32_0 : i32, i32, i32
  }
  func.func @transform_8(%arg0: i32) -> (i32, i32) {
    %c0_i32 = arith.constant 0 : i32
    %c0_i32_0 = arith.constant 0 : i32
    %c0_i32_1 = arith.constant 0 : i32
    return %c0_i32, %c0_i32_0 : i32, i32
  }
  func.func @transform_9(%arg0: i32) -> (i32, i32, i32) {
    %c0_i32 = arith.constant 0 : i32
    %c0_i32_0 = arith.constant 0 : i32
    %c0_i32_1 = arith.constant 0 : i32
    return %arg0, %c0_i32, %c0_i32_0 : i32, i32, i32
  }
  func.func @transform_10(%arg0: i32) -> (i32, i32, i32) {
    %c0_i32 = arith.constant 0 : i32
    %c0_i32_0 = arith.constant 0 : i32
    %c0_i32_1 = arith.constant 0 : i32
    return %arg0, %c0_i32, %c0_i32_0 : i32, i32, i32
  }
  func.func @transform_11(%arg0: i32) -> (i32, i32, i32) {
    %c0_i32 = arith.constant 0 : i32
    %c0_i32_0 = arith.constant 0 : i32
    %c0_i32_1 = arith.constant 0 : i32
    return %arg0, %c0_i32, %c0_i32_0 : i32, i32, i32
  }
}

module attributes {stable_mosaic.version = 11 : i64} {
  func.func @_blur_kernel(%arg0: i32, %arg1: memref<6x1280xf32, #tpu.memory_space<vmem>>, %arg2: memref<6x1152xf32, #tpu.memory_space<vmem>>) attributes {dimension_semantics = [#tpu.dimension_semantics<arbitrary>], iteration_bounds = array<i64: 1>, scalar_prefetch = 0 : i64, scratch_operands = 0 : i64, tpu.core_type = #tpu.core_type<tc>, window_params = [{pipeline_mode = #tpu.pipeline_mode<synchronous>, transform_indices = @transform_0, window_bounds = array<i64: 6, 1280>}, {pipeline_mode = #tpu.pipeline_mode<synchronous>, transform_indices = @transform_1, window_bounds = array<i64: 6, 1152>}]} {
    %c0 = arith.constant 0 : index
    %c0_0 = arith.constant 0 : index
    %0 = vector.load %arg1[%c0, %c0_0] : memref<6x1280xf32, #tpu.memory_space<vmem>>, vector<6x1280xf32>
    %1 = vector.extract_strided_slice %0 {offsets = [0, 0], sizes = [6, 1220], strides = [1, 1]} : vector<6x1280xf32> to vector<6x1220xf32>
    %2 = vector.extract_strided_slice %0 {offsets = [0, 1], sizes = [6, 1220], strides = [1, 1]} : vector<6x1280xf32> to vector<6x1220xf32>
    %cst = arith.constant 2.000000e+00 : f32
    %3 = vector.broadcast %cst : f32 to vector<6x1220xf32>
    %4 = arith.mulf %3, %2 : vector<6x1220xf32>
    %5 = arith.addf %1, %4 : vector<6x1220xf32>
    %6 = vector.extract_strided_slice %0 {offsets = [0, 2], sizes = [6, 1220], strides = [1, 1]} : vector<6x1280xf32> to vector<6x1220xf32>
    %7 = arith.addf %5, %6 : vector<6x1220xf32>
    %cst_1 = arith.constant 2.500000e-01 : f32
    %8 = vector.broadcast %cst_1 : f32 to vector<6x1220xf32>
    %9 = arith.mulf %7, %8 : vector<6x1220xf32>
    %10 = vector.extract_strided_slice %9 {offsets = [0, 0], sizes = [6, 1152], strides = [1, 1]} : vector<6x1220xf32> to vector<6x1152xf32>
    %11 = vector.extract_strided_slice %9 {offsets = [0, 34], sizes = [6, 1152], strides = [1, 1]} : vector<6x1220xf32> to vector<6x1152xf32>
    %cst_2 = arith.constant 2.000000e+00 : f32
    %12 = vector.broadcast %cst_2 : f32 to vector<6x1152xf32>
    %13 = arith.mulf %12, %11 : vector<6x1152xf32>
    %14 = arith.addf %10, %13 : vector<6x1152xf32>
    %15 = vector.extract_strided_slice %9 {offsets = [0, 68], sizes = [6, 1152], strides = [1, 1]} : vector<6x1220xf32> to vector<6x1152xf32>
    %16 = arith.addf %14, %15 : vector<6x1152xf32>
    %cst_3 = arith.constant 2.500000e-01 : f32
    %17 = vector.broadcast %cst_3 : f32 to vector<6x1152xf32>
    %18 = arith.mulf %16, %17 : vector<6x1152xf32>
    %c0_4 = arith.constant 0 : index
    %c0_5 = arith.constant 0 : index
    %19 = vector.load %arg2[%c0_4, %c0_5] : memref<6x1152xf32, #tpu.memory_space<vmem>>, vector<6x1152xf32>
    tpu.vector_store %arg2[%c0_4, %c0_5], %18 {strides = array<i32>} : memref<6x1152xf32, #tpu.memory_space<vmem>>, vector<6x1152xf32>,
    return
  }
  func.func @transform_0(%arg0: i32) -> (i32, i32) {
    %c0_i32 = arith.constant 0 : i32
    %c0_i32_0 = arith.constant 0 : i32
    %c0_i32_1 = arith.constant 0 : i32
    return %c0_i32, %c0_i32_0 : i32, i32
  }
  func.func @transform_1(%arg0: i32) -> (i32, i32) {
    %c0_i32 = arith.constant 0 : i32
    %c0_i32_0 = arith.constant 0 : i32
    %c0_i32_1 = arith.constant 0 : i32
    return %c0_i32, %c0_i32_0 : i32, i32
  }
}

</mosaic_0001>

<bundles_post_ra>
// kernel: generator_block_forward.3
= control target key start
LH: loop header
LB: loop body
LE: loop exit
PB: predicated region body
PF: predicated region fallthrough
CT: control target
= control target key end

     0   :  { %s1252_s24 = smov 0   ;;  %s1370_s0 = inlined_call_operand.vmem [shape: f32[2,16,1], index: 0, kind: input, shape index: {}]   ;;  %s1371_s1 = inlined_call_operand.vmem [shape: f32[2,8,1], index: 1, kind: input, shape index: {}]   ;;  %s1372_s2 = inlined_call_operand.vmem [shape: f32[2,1,384], index: 2, kind: input, shape index: {}]   ;;  %s1373_s3 = inlined_call_operand.vmem [shape: f32[8,1], index: 3, kind: input, shape index: {}]   ;;  %s1374_s4 = inlined_call_operand.vmem [shape: f32[8,1], index: 4, kind: input, shape index: {}]   ;;  %s1375_s5 = inlined_call_operand.vmem [shape: bf16[2,16,512], index: 5, kind: input, shape index: {}]   ;;  %s1376_s6 = inlined_call_operand.vmem [shape: bf16[8,144], index: 6, kind: input, shape index: {}]   ;;  %s1377_s7 = inlined_call_operand.vmem [shape: bf16[2,8,384], index: 7, kind: output, shape index: {}]  }
   0x1 LB: > { %s1018_s25 = sadd.s32 4294967295, %s1200_s24   ;;  %p1022_p0 = scmp.ge.s32.totalorder %s1200_s24, 1  ;;  %s1200_s24 = sphi %s1252_s24, %s17_s24  }
   0x2   : > { %p265_p1 = scmp.lt.s32.totalorder %s1200_s24, 3 }
   0x4   : > { %p266_p2 = pnand %p1022_p0, %p265_p1 }
   0x5   : > { %p310_p3 = scmp.lt.s32.totalorder (!%p266_p2), %s1018_s25, 1  ;;  %s1204_s11 = smov (!%p266_p2), 92  }
   0x6   : > { %269 = sbr.rel (%p266_p2) target bundleno = 502 (0x1f6), region = 48  ;;  %s1205_s12 = smov (!%p266_p2), 91  }
   0x7   : > { %s1206_s13 = smov (!%p266_p2), 108   ;;  %s1207_s14 = smov (!%p266_p2), 109  }
   0x8   : > { %s1208_s15 = smov (!%p266_p2), 90   ;;  %s1209_s16 = smov (!%p266_p2), 110  }
   0x9   : > { %s1210_s17 = smov (!%p266_p2), 126   ;;  %s1211_s18 = smov (!%p266_p2), 127  }
   0xb   : > { %v1202_v0 = vmov 0   ;;  %s1379_s25 = smov (!%p310_p3, %s1018_s25), 1  ;;  %v1203_v5 = vmov 839922192   ;;  %v905_v38 = vld [vmem:[%s1374_s4] sm:$0xff]  ;;  %vm402_vm0 = vcmask 1043456  }
   0xc   : > { %1191 = vset.pattern.permute.xlu0 %v1202_v0  ;;  %1192 = vset.pattern.permute.xlu1 %v1202_v0  ;;  %s1142_s26 = sshll.u32 %s1379_s25, 4  ;;  %s1143_s30 = sshll.u32 %s1379_s25, 5  ;;  %v348_v6 = vunpack.c.l.s4 %v1203_v5  ;;  %vm566_vm1 = vcmask 744448   ;;  %vm512_vm2 = vcmask 883712   ;;  %vm539_vm3 = vcmask 752640  }
   0xd   : > { %1193 = vset.pattern.permute.xlu2 %v1202_v0  ;;  %s314_s29 = scalar_lea.vmem %s1370_s0, %s1142_s26  ;;  %s327_s10 = scalar_lea.vmem %s1375_s5, %s1143_s30  ;;  %vm485_vm4 = vcmask 891904   ;;  %vm593_vm5 = vcmask 736256   ;;  %vm458_vm6 = vcmask 900096   ;;  %vm431_vm7 = vcmask 1031168  }
   0xe   : > { %v338_v1 = vld [vmem:[%s314_s29] sm:$0xff]  ;;  %v339_v3 = vld [vmem:[%s314_s29 + $0x8] sm:$0xff]  ;;  %v349_v8 = vunpack.c.0.s8 %v348_v6  ;;  %v336_v21 = vld [vmem:[%s327_s10 + $0x10] sm:$0xff]  ;;  %vm794_vm8 = vcmask 130048   ;;  %s1025_s23 = sshll.u32 %s1379_s25, 3  ;;  %vm404_vm9 = vcmask 1039360  }
   0xf   : > { %v340_v2 = vpack.c.bf16 %v338_v1, %v338_v1  ;;  %v341_v4 = vpack.c.bf16 %v339_v3, %v339_v3  ;;  %v334_v7 = vld [vmem:[%s327_s10] sm:$0xff]  ;;  %v335_v9 = vld [vmem:[%s327_s10 + $0x8] sm:$0xff]  ;;  %v337_v22 = vld [vmem:[%s327_s10 + $0x18] sm:$0xff]  ;;  %v364_v25 = vunpack.c.l.bf16 %v336_v21  ;;  %v365_v27 = vunpack.c.h.bf16 %v336_v21  ;;  %s318_s28 = scalar_lea.vmem %s1371_s1, %s1025_s23  ;;  %s1171_s8 = smul.u32 3, %s1379_s25 }
  0x10   : > { %v360_v10 = vunpack.c.l.bf16 %v334_v7  ;;  %v361_v12 = vunpack.c.h.bf16 %v334_v7  ;;  %v362_v13 = vunpack.c.l.bf16 %v335_v9  ;;  %v363_v14 = vunpack.c.h.bf16 %v335_v9 }
  0x11   : > { %344 = vperm.xlu0 %1191, %v340_v2   ;;  %v366_v28 = vunpack.c.l.bf16 %v337_v22  ;;  %v367_v29 = vunpack.c.h.bf16 %v337_v22 }
  0x19   : > { %353 = vperm.xlu0 %1191, %v341_v4  }
  0x83   : > { %v345_v11 = vpop.permute.xlu0 %344 }
  0x84   : > { %v350_v15 = vperm.slane %v345_v11, %v349_v8 }
  0x86   : > { %v368_v16 = vunpack.c.l.bf16 %v350_v15 }
  0x88   : > { %v370_v17 = vmul.f32 %v368_v16, %v360_v10  ;;  %v371_v18 = vmul.f32 %v368_v16, %v361_v12  ;;  %v372_v19 = vmul.f32 %v368_v16, %v362_v13  ;;  %v373_v20 = vmul.f32 %v368_v16, %v363_v14 }
  0x8a   : > { %v378_v23 = vpack.c.bf16 %v371_v18, %v370_v17  ;;  %v379_v24 = vpack.c.bf16 %v373_v20, %v372_v19 }
  0x8b   : > { %v354_v26 = vpop.permute.xlu0 %353 }
  0x8c   : > { %382 = vst [vmem:[#allocation2] sm:$0xff] %v378_v23  ;;  %v359_v30 = vperm.slane %v354_v26, %v349_v8  ;;  %526 = vrot.lane.b32.xlu0 %v378_v23, %s1204_s11  ;;  %553 = vrot.lane.b32.xlu1 %v378_v23, %s1205_s12 }
  0x8d   : > { %383 = vst [vmem:[#allocation2 + $0x8] sm:$0xf] %v379_v24 }
  0x8e   : > { %v369_v31 = vunpack.c.l.bf16 %v359_v30 }
  0x90   : > { %v374_v32 = vmul.f32 %v369_v31, %v364_v25  ;;  %v375_v33 = vmul.f32 %v369_v31, %v365_v27  ;;  %v376_v34 = vmul.f32 %v369_v31, %v366_v28  ;;  %v377_v35 = vmul.f32 %v369_v31, %v367_v29 }
  0x92   : > { %v380_v36 = vpack.c.bf16 %v375_v33, %v374_v32  ;;  %v381_v37 = vpack.c.bf16 %v377_v35, %v376_v34 }
  0x94   : > { %384 = vst [vmem:[#allocation2 + $0xc] sm:$0xff] %v380_v36  ;;  %555 = vrot.lane.b32.xlu1 %v379_v24, %s1205_s12  ;;  %532 = vrot.lane.b32.xlu0 %v381_v37, %s1204_s11 }
  0x95   : > { %385 = vst [vmem:[#allocation2 + $0x14] sm:$0xf] %v381_v37  ;;  %557 = vrot.lane.b32.xlu2 %v380_v36, %s1205_s12 }
  0x9c   : > { %528 = vrot.lane.b32.xlu1 %v379_v24, %s1204_s11  ;;  %503 = vrot.lane.b32.xlu0 %v380_v36, %s1206_s13 }
  0x9d   : > { %559 = vrot.lane.b32.xlu2 %v381_v37, %s1205_s12  ;;  %s1172_s12 = smul.u32 12, %s1379_s25 }
  0xa4   : > { %499 = vrot.lane.b32.xlu1 %v378_v23, %s1206_s13  ;;  %474 = vrot.lane.b32.xlu0 %v379_v24, %s1207_s14 }
  0xa5   : > { %530 = vrot.lane.b32.xlu2 %v380_v36, %s1204_s11  ;;  %s322_s11 = scalar_lea.vmem %s1372_s2, %s1171_s8 }
  0xac   : > { %505 = vrot.lane.b32.xlu1 %v381_v37, %s1206_s13  ;;  %580 = vrot.lane.b32.xlu0 %v378_v23, %s1208_s15 }
  0xad   : > { %501 = vrot.lane.b32.xlu2 %v379_v24, %s1206_s13 }
  0xb4   : > { %476 = vrot.lane.b32.xlu1 %v380_v36, %s1207_s14  ;;  %586 = vrot.lane.b32.xlu0 %v381_v37, %s1208_s15 }
  0xb5   : > { %472 = vrot.lane.b32.xlu2 %v378_v23, %s1207_s14 }
  0xbc   : > { %582 = vrot.lane.b32.xlu1 %v379_v24, %s1208_s15  ;;  %449 = vrot.lane.b32.xlu0 %v380_v36, %s1209_s16 }
  0xbd   : > { %478 = vrot.lane.b32.xlu2 %v381_v37, %s1207_s14 }
  0xc4   : > { %445 = vrot.lane.b32.xlu1 %v378_v23, %s1209_s16  ;;  %420 = vrot.lane.b32.xlu0 %v379_v24, %s1210_s17 }
  0xc5   : > { %584 = vrot.lane.b32.xlu2 %v380_v36, %s1208_s15  ;;  %s332_s15 = scalar_lea.vmem %s1377_s7, %s1172_s12 }
  0xcc   : > { %451 = vrot.lane.b32.xlu1 %v381_v37, %s1209_s16  ;;  %390 = vrot.lane.b32.xlu0 %v378_v23, %s1211_s18 }
  0xcd   : > { %447 = vrot.lane.b32.xlu2 %v379_v24, %s1209_s16 }
  0xd4   : > { %422 = vrot.lane.b32.xlu1 %v380_v36, %s1210_s17  ;;  %396 = vrot.lane.b32.xlu0 %v381_v37, %s1211_s18 }
  0xd5   : > { %418 = vrot.lane.b32.xlu2 %v378_v23, %s1210_s17 }
  0xdc   : > { %392 = vrot.lane.b32.xlu1 %v379_v24, %s1211_s18  ;;  %908 = vperm.xlu0 %1191, %v905_v38  }
  0xdd   : > { %424 = vrot.lane.b32.xlu2 %v381_v37, %s1210_s17 }
  0xe5   : > { %394 = vrot.lane.b32.xlu2 %v380_v36, %s1211_s18 }
  0xef   : > { %v558_v39 = vpop.permute.xlu2 %557 }
  0xf0   : > { %v563_v41 = vrot.slane %v558_v39, 4 }
  0xf7   : > { %v560_v40 = vpop.permute.xlu2 %559 }
  0xf8   : > { %v564_v42 = vrot.slane %v560_v40, 4 }
  0xfa   : > { %v569_v43 = vsel %vm402_vm0, %v563_v41, %v564_v42  ;;  %v571_v44 = vsel %vm566_vm1, %v560_v40, %v564_v42 }
  0xfb   : > { %v570_v45 = vsel %vm566_vm1, %v558_v39, %v569_v43  ;;  %579 = vst [vmem:[#allocation2 + $0xbc] sm:$0xf] %v571_v44 }
  0xfc   : > { %578 = vst [vmem:[#allocation2 + $0xb4] sm:$0xff] %v570_v45 }
  0xfe   : > { %v554_v46 = vpop.permute.xlu1 %553  ;;  %v527_v47 = vpop.permute.xlu0 %526 }
  0xff   : > { %v531_v48 = vpop.permute.xlu2 %530  ;;  %v561_v51 = vrot.slane %v554_v46, 4  ;;  %v534_v2 = vrot.slane %v527_v47, 4 }
 0x100   : > { %v536_v52 = vrot.slane %v531_v48, 4 }
 0x103   : > { %v1166_v7 = vld [vmem:[#allocation2 + $0xb0] sm:$0xf0]  ;;  %v1117_v8 = vld [vmem:[#allocation2 + $0xb4] sm:$0xf0] }
 0x106   : > { %v556_v49 = vpop.permute.xlu1 %555  ;;  %v533_v50 = vpop.permute.xlu0 %532 }
 0x107   : > { %v562_v53 = vrot.slane %v556_v49, 4  ;;  %v502_v54 = vpop.permute.xlu2 %501  ;;  %v537_v55 = vrot.slane %v533_v50, 4 }
 0x108   : > { %v508_v56 = vrot.slane %v502_v54, 4 }
 0x109   : > { %v565_v57 = vsel %vm402_vm0, %v561_v51, %v562_v53  ;;  %v568_v58 = vsel %vm566_vm1, %v556_v49, %v562_v53  ;;  %v542_v59 = vsel %vm402_vm0, %v536_v52, %v537_v55  ;;  %v544_v63 = vsel %vm539_vm3, %v533_v50, %v537_v55 }
 0x10a   : > { %v567_v60 = vsel %vm566_vm1, %v554_v46, %v565_v57  ;;  %577 = vst [vmem:[#allocation2 + $0xb0] sm:$0xf] %v568_v58  ;;  %v514_v61 = vsel %vm512_vm2, %v502_v54, %v508_v56  ;;  %v543_v62 = vsel %vm539_vm3, %v531_v48, %v542_v59 }
 0x10b   : > { %576 = vst [vmem:[#allocation2 + $0xa8] sm:$0xff] %v567_v60 }
 0x10c   : > { %523 = vst [vmem:[#allocation2 + $0x80] sm:$0xf] %v514_v61 }
 0x10d   : > { %551 = vst [vmem:[#allocation2 + $0x9c] sm:$0xff] %v543_v62 }
 0x10e   : > { %552 = vst [vmem:[#allocation2 + $0xa4] sm:$0xf] %v544_v63  ;;  %v529_v0 = vpop.permute.xlu1 %528  ;;  %v504_v1 = vpop.permute.xlu0 %503 }
 0x10f   : > { %v535_v3 = vrot.slane %v529_v0, 4  ;;  %v473_v4 = vpop.permute.xlu2 %472  ;;  %v509_v35 = vrot.slane %v504_v1, 4 }
 0x110   : > { %v480_v16 = vrot.slane %v473_v4, 4 }
 0x111   : > { %v538_v5 = vsel %vm402_vm0, %v534_v2, %v535_v3  ;;  %v541_v6 = vsel %vm539_vm3, %v529_v0, %v535_v3 }
 0x112   : > { %v540_v9 = vsel %vm539_vm3, %v527_v47, %v538_v5  ;;  %550 = vst [vmem:[#allocation2 + $0x98] sm:$0xf] %v541_v6  ;;  %v1115_v10 = vld [vmem:[#allocation2 + $0xa8] sm:$0xf]  ;;  %v1165_v11 = vld [vmem:[#allocation2 + $0xac] sm:$0xf] }
 0x113   : > { %549 = vst [vmem:[#allocation2 + $0x90] sm:$0xff] %v540_v9  ;;  %v1116_v12 = vor.u32 %v1166_v7, %v1115_v10  ;;  %v1120_v13 = vor.u32 %v1165_v11, %v1117_v8  ;;  %v1309_v10 = vld [vmem:[%s1376_s6] sm:$0xff] }
 0x114   : > { %v1163_v24 = vld [vmem:[#allocation2 + $0x98] sm:$0xf0]  ;;  %v1105_v25 = vld [vmem:[#allocation2 + $0x9c] sm:$0xf0] }
 0x115   : > { %798 = vmatpush.bf16.msra.mxu0 %v1116_v12  ;;  %824 = vmatpush.bf16.msra.mxu2 %v1120_v13 }
 0x116   : > { %v500_v14 = vpop.permute.xlu1 %499  ;;  %v475_v15 = vpop.permute.xlu0 %474 }
 0x117   : > { %v507_v17 = vrot.slane %v500_v14, 4  ;;  %v479_v18 = vpop.permute.xlu2 %478  ;;  %v481_v19 = vrot.slane %v475_v15, 4 }
 0x118   : > { %v483_v20 = vrot.slane %v479_v18, 4 }
 0x119   : > { %v511_v21 = vsel %vm402_vm0, %v507_v17, %v508_v56  ;;  %v484_v22 = vsel %vm402_vm0, %v480_v16, %v481_v19  ;;  %v487_v23 = vsel %vm485_vm4, %v475_v15, %v481_v19  ;;  %v646_v19 = vunpack.c.h.b16 %v1309_v10 }
 0x11a   : > { %v513_v26 = vsel %vm512_vm2, %v500_v14, %v511_v21  ;;  %v490_v27 = vsel %vm485_vm4, %v479_v18, %v483_v20  ;;  %v486_v28 = vsel %vm485_vm4, %v473_v4, %v484_v22  ;;  %496 = vst [vmem:[#allocation2 + $0x68] sm:$0xf] %v487_v23  ;;  %v1103_v29 = vld [vmem:[#allocation2 + $0x90] sm:$0xf]  ;;  %v1162_v30 = vld [vmem:[#allocation2 + $0x94] sm:$0xf] }
 0x11b   : > { %522 = vst [vmem:[#allocation2 + $0x78] sm:$0xff] %v513_v26  ;;  %v1104_v31 = vor.u32 %v1163_v24, %v1103_v29  ;;  %v1108_v32 = vor.u32 %v1162_v30, %v1105_v25  ;;  %v1123_v18 = vld [vmem:[#allocation2 + $0xb0] sm:$0xf] }
 0x11c   : > { %498 = vst [vmem:[#allocation2 + $0x74] sm:$0xf] %v490_v27 }
 0x11d   : > { %495 = vst [vmem:[#allocation2 + $0x60] sm:$0xff] %v486_v28  ;;  %799 = vmatpush.bf16.msra.mxu0 %v1104_v31  ;;  %825 = vmatpush.bf16.msra.mxu2 %v1108_v32 }
 0x11e   : > { %v506_v33 = vpop.permute.xlu1 %505  ;;  %v581_v34 = vpop.permute.xlu0 %580 }
 0x11f   : > { %v510_v36 = vrot.slane %v506_v33, 4  ;;  %v585_v37 = vpop.permute.xlu2 %584  ;;  %v588_v62 = vrot.slane %v581_v34, 4 }
 0x120   : > { %v590_v43 = vrot.slane %v585_v37, 4 }
 0x121   : > { %v515_v38 = vsel %vm402_vm0, %v509_v35, %v510_v36  ;;  %v517_v39 = vsel %vm512_vm2, %v506_v33, %v510_v36  ;;  %v1167_v33 = vld [vmem:[#allocation2 + $0xb8] sm:$0xf0] }
 0x122   : > { %v516_v40 = vsel %vm512_vm2, %v504_v1, %v515_v38  ;;  %525 = vst [vmem:[#allocation2 + $0x8c] sm:$0xf] %v517_v39  ;;  %v1091_v51 = vld [vmem:[#allocation2 + $0x78] sm:$0xf]  ;;  %v1159_v52 = vld [vmem:[#allocation2 + $0x7c] sm:$0xf]  ;;  %v1124_v35 = vor.u32 %v1167_v33, %v1123_v18 }
 0x123   : > { %524 = vst [vmem:[#allocation2 + $0x84] sm:$0xff] %v516_v40  ;;  %v1111_v38 = vld [vmem:[#allocation2 + $0x98] sm:$0xf] }
 0x124   : > { %v1079_v3 = vld [vmem:[#allocation2 + $0x60] sm:$0xf]  ;;  %v1156_v4 = vld [vmem:[#allocation2 + $0x64] sm:$0xf] }
 0x126   : > { %v477_v41 = vpop.permute.xlu1 %476  ;;  %v587_v42 = vpop.permute.xlu0 %586 }
 0x127   : > { %v482_v44 = vrot.slane %v477_v41, 4  ;;  %v448_v45 = vpop.permute.xlu2 %447  ;;  %v591_v46 = vrot.slane %v587_v42, 4 }
 0x128   : > { %v454_v47 = vrot.slane %v448_v45, 4 }
 0x129   : > { %v488_v48 = vsel %vm402_vm0, %v482_v44, %v483_v20  ;;  %v596_v49 = vsel %vm402_vm0, %v590_v43, %v591_v46  ;;  %v598_v50 = vsel %vm593_vm5, %v587_v42, %v591_v46  ;;  %v1164_v43 = vld [vmem:[#allocation2 + $0xa0] sm:$0xf0] }
 0x12a   : > { %v489_v53 = vsel %vm485_vm4, %v477_v41, %v488_v48  ;;  %v460_v54 = vsel %vm458_vm6, %v448_v45, %v454_v47  ;;  %v597_v55 = vsel %vm593_vm5, %v585_v37, %v596_v49  ;;  %606 = vst [vmem:[#allocation2 + $0xd4] sm:$0xf] %v598_v50  ;;  %v1160_v56 = vld [vmem:[#allocation2 + $0x80] sm:$0xf0]  ;;  %v1093_v57 = vld [vmem:[#allocation2 + $0x84] sm:$0xf0]  ;;  %v1324_v37 = vpack.c.b16 %v646_v19, %v646_v19 }
 0x12b   : > { %497 = vst [vmem:[#allocation2 + $0x6c] sm:$0xff] %v489_v53  ;;  %v1092_v58 = vor.u32 %v1160_v56, %v1091_v51  ;;  %v1096_v59 = vor.u32 %v1159_v52, %v1093_v57  ;;  %v1112_v44 = vor.u32 %v1164_v43, %v1111_v38  ;;  %v1099_v49 = vld [vmem:[#allocation2 + $0x80] sm:$0xf]  ;;  %v1087_v53 = vld [vmem:[#allocation2 + $0x68] sm:$0xf]  ;;  %v645_v38 = vunpack.c.l.b16 %v1309_v10 }
 0x12c   : > { %469 = vst [vmem:[#allocation2 + $0x50] sm:$0xf] %v460_v54  ;;  %v876_v52 = vld [vmem:[%s318_s28] sm:$0xff]  ;;  %v1158_v54 = vld [vmem:[#allocation2 + $0x70] sm:$0xf0] }
 0x12d   : > { %605 = vst [vmem:[#allocation2 + $0xcc] sm:$0xff] %v597_v55  ;;  %800 = vmatpush.bf16.msra.mxu0 %v1092_v58  ;;  %826 = vmatpush.bf16.msra.mxu2 %v1096_v59  ;;  %v886_v55 = vld [vmem:[%s1373_s3] sm:$0xff] }
 0x12e   : > { %v583_v60 = vpop.permute.xlu1 %582  ;;  %v1301_v61 = vpop.permute.xlu0 %449  ;;  %879 = vperm.xlu1 %1192, %v876_v52   ;;  %896 = vperm.xlu2 %1193, %v886_v55   ;;  %v1031_v43 = vld [vmem:[#allocation2] sm:$0xf] }
 0x12f   : > { %v589_v63 = vrot.slane %v583_v60, 4  ;;  %v419_v0 = vpop.permute.xlu2 %418  ;;  %v455_v41 = vrot.slane %v1301_v61, 4  ;;  %v885_v52 = vld [vmem:[%s322_s11] sm:$0x7] }
 0x130   : > { %v426_v13 = vrot.slane %v419_v0, 4  ;;  %v888_v55 = vperm.slane %v885_v52, 0 }
 0x131   : > { %v592_v1 = vsel %vm402_vm0, %v588_v62, %v589_v63  ;;  %v595_v2 = vsel %vm593_vm5, %v583_v60, %v589_v63 }
 0x132   : > { %v594_v5 = vsel %vm593_vm5, %v581_v34, %v592_v1  ;;  %604 = vst [vmem:[#allocation2 + $0xc8] sm:$0xf] %v595_v2  ;;  %v1157_v6 = vld [vmem:[#allocation2 + $0x68] sm:$0xf0]  ;;  %v1081_v7 = vld [vmem:[#allocation2 + $0x6c] sm:$0xf0] }
 0x133   : > { %603 = vst [vmem:[#allocation2 + $0xc0] sm:$0xff] %v594_v5  ;;  %v1080_v8 = vor.u32 %v1157_v6, %v1079_v3  ;;  %v1084_v9 = vor.u32 %v1156_v4, %v1081_v7  ;;  %v1170_v34 = vld [vmem:[#allocation2 + $0xd0] sm:$0xf0] }
 0x134   : > { %v1169_v23 = vld [vmem:[#allocation2 + $0xc8] sm:$0xf0]  ;;  %v1129_v24 = vld [vmem:[#allocation2 + $0xcc] sm:$0xf0] }
 0x135   : > { %801 = vmatpush.bf16.msra.mxu0 %v1080_v8  ;;  %827 = vmatpush.bf16.msra.mxu2 %v1084_v9 }
 0x136   : > { %v446_v11 = vpop.permute.xlu1 %445  ;;  %v421_v12 = vpop.permute.xlu0 %420 }
 0x137   : > { %v453_v14 = vrot.slane %v446_v11, 4  ;;  %v1311_v15 = vpop.permute.xlu2 %424  ;;  %v427_v16 = vrot.slane %v421_v12, 4 }
 0x138   : > { %v429_v17 = vrot.slane %v1311_v15, 4 }
 0x139   : > { %v457_v20 = vsel %vm402_vm0, %v453_v14, %v454_v47  ;;  %v430_v21 = vsel %vm402_vm0, %v426_v13, %v427_v16  ;;  %v433_v22 = vsel %vm431_vm7, %v421_v12, %v427_v16  ;;  %v1135_v25 = vld [vmem:[#allocation2 + $0xc8] sm:$0xf]  ;;  %v1161_v47 = vld [vmem:[#allocation2 + $0x88] sm:$0xf0] }
 0x13a   : > { %v459_v26 = vsel %vm458_vm6, %v446_v11, %v457_v20  ;;  %v436_v27 = vsel %vm431_vm7, %v1311_v15, %v429_v17  ;;  %v432_v28 = vsel %vm431_vm7, %v419_v0, %v430_v21  ;;  %442 = vst [vmem:[#allocation2 + $0x38] sm:$0xf] %v433_v22  ;;  %v1127_v29 = vld [vmem:[#allocation2 + $0xc0] sm:$0xf]  ;;  %v1168_v30 = vld [vmem:[#allocation2 + $0xc4] sm:$0xf]  ;;  %v1136_v36 = vor.u32 %v1170_v34, %v1135_v25 }
 0x13b   : > { %468 = vst [vmem:[#allocation2 + $0x48] sm:$0xff] %v459_v26  ;;  %v1128_v31 = vor.u32 %v1169_v23, %v1127_v29  ;;  %v1132_v32 = vor.u32 %v1168_v30, %v1129_v24  ;;  %v1100_v51 = vor.u32 %v1161_v47, %v1099_v49  ;;  %v1075_v11 = vld [vmem:[#allocation2 + $0x50] sm:$0xf]  ;;  %v647_v47 = vpack.c.b16 %v645_v38, %v645_v38 }
 0x13c   : > { %444 = vst [vmem:[#allocation2 + $0x44] sm:$0xf] %v436_v27 }
 0x13d   : > { %441 = vst [vmem:[#allocation2 + $0x30] sm:$0xff] %v432_v28  ;;  %818 = vmatpush.bf16.msra.mxu1 %v1128_v31  ;;  %844 = vmatpush.bf16.msra.mxu3 %v1132_v32 }
 0x13e   : > { %v452_v39 = vpop.permute.xlu1 %451  ;;  %v1326_v40 = vpop.permute.xlu0 %390 }
 0x13f   : > { %v456_v42 = vrot.slane %v452_v39, 4  ;;  %v395_v50 = vpop.permute.xlu2 %394  ;;  %v398_v16 = vrot.slane %v1326_v40, 4 }
 0x140   : > { %1138 = vmatmul.msk.bf16.vlgmr.msra.gmra.mxu3 %vm794_vm8, %v1324_v37  ;;  %1137 = vmatmul.msk.bf16.vlgmr.msra.gmra.mxu1 %vm794_vm8, %v1324_v37  ;;  %v400_v58 = vrot.slane %v395_v50, 4 }
 0x141   : > { %850 = vmatpush.bf16.msrb.mxu1 %v1124_v35  ;;  %870 = vmatpush.bf16.msrb.mxu3 %v1136_v36  ;;  %v461_v45 = vsel %vm402_vm0, %v455_v41, %v456_v42  ;;  %v463_v46 = vsel %vm458_vm6, %v452_v39, %v456_v42  ;;  %v1063_v13 = vld [vmem:[#allocation2 + $0x38] sm:$0xf]  ;;  %v1145_v39 = vld [vmem:[#allocation2 + $0x8] sm:$0xf0]  ;;  %v1039_v41 = vld [vmem:[#allocation2 + $0x8] sm:$0xf] }
 0x142   : > { %v462_v48 = vsel %vm458_vm6, %v1301_v61, %v461_v45  ;;  %471 = vst [vmem:[#allocation2 + $0x5c] sm:$0xf] %v463_v46  ;;  %v1088_v61 = vor.u32 %v1158_v54, %v1087_v53  ;;  %v1067_v1 = vld [vmem:[#allocation2 + $0x48] sm:$0xf]  ;;  %v1153_v2 = vld [vmem:[#allocation2 + $0x4c] sm:$0xf]  ;;  %v1032_v45 = vor.u32 %v1145_v39, %v1031_v43 }
 0x143   : > { %470 = vst [vmem:[#allocation2 + $0x54] sm:$0xff] %v462_v48  ;;  %v1152_v14 = vld [vmem:[#allocation2 + $0x40] sm:$0xf0]  ;;  %v890_v54 = vperm.slane %v885_v52, 2 }
 0x144   : > { %v1064_v18 = vor.u32 %v1152_v14, %v1063_v13  ;;  %v1055_v21 = vld [vmem:[#allocation2 + $0x30] sm:$0xf]  ;;  %v1150_v22 = vld [vmem:[#allocation2 + $0x34] sm:$0xf] }
 0x145   : > { %851 = vmatpush.bf16.msrb.mxu1 %v1112_v44  ;;  %v1144_v44 = vld [vmem:[#allocation2 + $0x4] sm:$0xf] }
 0x146   : > { %v423_v56 = vpop.permute.xlu1 %422  ;;  %v397_v57 = vpop.permute.xlu0 %396 }
 0x147   : > { %v428_v59 = vrot.slane %v423_v56, 4  ;;  %v401_v60 = vrot.slane %v397_v57, 4 }
 0x149   : > { %852 = vmatpush.bf16.msrb.mxu1 %v1100_v51  ;;  %v434_v62 = vsel %vm402_vm0, %v428_v59, %v429_v17  ;;  %v407_v63 = vsel %vm402_vm0, %v400_v58, %v401_v60  ;;  %v409_v0 = vsel %vm404_vm9, %v397_v57, %v401_v60  ;;  %v1155_v3 = vld [vmem:[#allocation2 + $0x58] sm:$0xf0] }
 0x14a   : > { %v435_v4 = vsel %vm431_vm7, %v423_v56, %v434_v62  ;;  %v408_v5 = vsel %vm404_vm9, %v395_v50, %v407_v63  ;;  %417 = vst [vmem:[#allocation2 + $0x2c] sm:$0xf] %v409_v0  ;;  %v1154_v6 = vld [vmem:[#allocation2 + $0x50] sm:$0xf0]  ;;  %v1069_v7 = vld [vmem:[#allocation2 + $0x54] sm:$0xf0]  ;;  %v1076_v12 = vor.u32 %v1155_v3, %v1075_v11 }
 0x14b   : > { %443 = vst [vmem:[#allocation2 + $0x3c] sm:$0xff] %v435_v4  ;;  %v1068_v8 = vor.u32 %v1154_v6, %v1067_v1  ;;  %v1072_v9 = vor.u32 %v1153_v2, %v1069_v7  ;;  %v889_v2 = vperm.slane %v885_v52, 1 }
 0x14c   : > { %416 = vst [vmem:[#allocation2 + $0x24] sm:$0xff] %v408_v5 }
 0x14d   : > { %853 = vmatpush.bf16.msrb.mxu1 %v1088_v61  ;;  %802 = vmatpush.bf16.msra.mxu0 %v1068_v8 }
 0x14e   : > { %828 = vmatpush.bf16.msra.mxu2 %v1072_v9  ;;  %v393_v15 = vpop.permute.xlu1 %392  ;;  %v909_v4 = vpop.permute.xlu0 %908 }
 0x14f   : > { %v399_v17 = vrot.slane %v393_v15, 4 }
 0x150   : > { %1139 = vmatmul.msk.bf16.vlgmr.msrb.gmra.mxu3 %vm794_vm8, %v1324_v37  ;;  %v1146_v37 = vld [vmem:[#allocation2 + $0x10] sm:$0xf0] }
 0x151   : > { %854 = vmatpush.bf16.msrb.mxu1 %v1076_v12  ;;  %v403_v19 = vsel %vm402_vm0, %v398_v16, %v399_v17  ;;  %v406_v20 = vsel %vm404_vm9, %v393_v15, %v399_v17  ;;  %v1149_v29 = vld [vmem:[#allocation2 + $0x28] sm:$0xf0]  ;;  %v1040_v42 = vor.u32 %v1146_v37, %v1039_v41 }
 0x152   : > { %v405_v23 = vsel %vm404_vm9, %v1326_v40, %v403_v19  ;;  %415 = vst [vmem:[#allocation2 + $0x20] sm:$0xf] %v406_v20  ;;  %v1151_v24 = vld [vmem:[#allocation2 + $0x38] sm:$0xf0]  ;;  %v1057_v25 = vld [vmem:[#allocation2 + $0x3c] sm:$0xf0] }
 0x153   : > { %414 = vst [vmem:[#allocation2 + $0x18] sm:$0xff] %v405_v23  ;;  %v1056_v26 = vor.u32 %v1151_v24, %v1055_v21  ;;  %v1060_v27 = vor.u32 %v1150_v22, %v1057_v25  ;;  %v1148_v30 = vld [vmem:[#allocation2 + $0x20] sm:$0xf0]  ;;  %v1045_v34 = vld [vmem:[#allocation2 + $0x24] sm:$0xf0] }
 0x154   : > { %v1033_v40 = vld [vmem:[#allocation2 + $0xc] sm:$0xf0] }
 0x155   : > { %855 = vmatpush.bf16.msrb.mxu1 %v1064_v18  ;;  %803 = vmatpush.bf16.msra.mxu0 %v1056_v26  ;;  %v1036_v46 = vor.u32 %v1144_v44, %v1033_v40 }
 0x156   : > { %829 = vmatpush.bf16.msra.mxu2 %v1060_v27 }
 0x159   : > { %v1051_v28 = vld [vmem:[#allocation2 + $0x20] sm:$0xf] }
 0x15a   : > { %v1052_v31 = vor.u32 %v1149_v29, %v1051_v28  ;;  %v1043_v32 = vld [vmem:[#allocation2 + $0x18] sm:$0xf]  ;;  %v1147_v33 = vld [vmem:[#allocation2 + $0x1c] sm:$0xf] }
 0x15b   : > { %v1044_v35 = vor.u32 %v1148_v30, %v1043_v32  ;;  %v1048_v36 = vor.u32 %v1147_v33, %v1045_v34 }
 0x15c   : > { %856 = vmatpush.bf16.msrb.mxu1 %v1052_v31 }
 0x15d   : > { %804 = vmatpush.bf16.msra.mxu0 %v1044_v35  ;;  %830 = vmatpush.bf16.msra.mxu2 %v1048_v36 }
 0x160   : > { %857 = vmatpush.bf16.msrb.mxu1 %v1040_v42 }
 0x161   : > { %805 = vmatpush.bf16.msra.mxu0 %v1032_v45  ;;  %831 = vmatpush.bf16.msra.mxu2 %v1036_v46 }
 0x163   : > { %858 = vmatmul.bf16.vlgmr.msrb.gmra.mxu1 %v647_v47 }
 0x164   : > { %806 = vmatmul.bf16.vlgmr.msra.gmra.mxu0 %v647_v47  ;;  %832 = vmatmul.bf16.vlgmr.msra.gmra.mxu2 %v647_v47 }
 0x188   : > { %v897_v56 = vpop.permute.xlu2 %896 }
 0x189   : > { %v901_v61 = vmul.f32 %v897_v56, %v890_v54  ;;  %v899_v63 = vmul.f32 %v897_v56, %v888_v55  ;;  %v900_v8 = vmul.f32 %v897_v56, %v889_v2 }
 0x1a0   : > { %v880_v58 = vpop.permute.xlu1 %879 }
 0x1bd   : > { %v820_v10 = vpop.f32.mrf.mxu1 }
 0x1c3   : > { %v846_v48 = vpop.f32.mrf.mxu3 }
 0x1c5   : > { %v822_v49 = vpop.f32.mrf.mxu1 }
 0x1cb   : > { %v848_v50 = vpop.f32.mrf.mxu3 }
 0x1d3   : > { %v872_v51 = vpop.f32.mrf.mxu3 }
 0x1db   : > { %v874_v53 = vpop.f32.mrf.mxu3 }
 0x1e0   : > { %v859_v57 = vpop.f32.mrf.mxu1 }
 0x1e1   : > { %v873_v59 = vadd.f32 %v872_v51, %v859_v57  ;;  %v807_v60 = vpop.f32.mrf.mxu0 }
 0x1e2   : > { %v821_v62 = vadd.f32 %v820_v10, %v807_v60 }
 0x1e3   : > { %v884_v0 = vmul.f32 %v880_v58, %v873_v59 }
 0x1e4   : > { %v882_v1 = vmul.f32 %v880_v58, %v821_v62 }
 0x1e5   : > { %v904_v3 = vadd.f32 %v901_v61, %v884_v0 }
 0x1e6   : > { %v902_v5 = vadd.f32 %v899_v63, %v882_v1 }
 0x1e7   : > { %v913_v6 = vadd.f32 %v909_v4, %v904_v3  ;;  %v833_v7 = vpop.f32.mrf.mxu2 }
 0x1e8   : > { %v847_v9 = vadd.f32 %v846_v48, %v833_v7  ;;  %v861_v11 = vpop.f32.mrf.mxu1  ;;  %v911_v14 = vadd.f32 %v909_v4, %v902_v5 }
 0x1e9   : > { %vm916_vm10 = vcmp.ge.f32.partialorder %v913_v6, 0.0  ;;  %v919_v12 = vmul.f32 0.2, %v913_v6  ;;  %v809_v13 = vpop.f32.mrf.mxu0 }
 0x1ea   : > { %v883_v15 = vmul.f32 %v880_v58, %v847_v9  ;;  %v917_v19 = vmul.f32 0.2, %v911_v14  ;;  %vm914_vm11 = vcmp.ge.f32.partialorder %v911_v14, 0.0 }
 0x1eb   : > { %v922_v16 = vsel %vm916_vm10, %v913_v6, %v919_v12 }
 0x1ec   : > { %v924_v17 = vpack.c.bf16 %v922_v16, %v922_v16  ;;  %v903_v18 = vadd.f32 %v900_v8, %v883_v15  ;;  %v920_v23 = vsel %vm914_vm11, %v911_v14, %v917_v19 }
 0x1ee   : > { %926 = vst [vmem:[%s332_s15 + $0x8] sm:$0xf] %v924_v17  ;;  %v912_v20 = vadd.f32 %v909_v4, %v903_v18 }
 0x1ef   : > { %v835_v21 = vpop.f32.mrf.mxu2 }
 0x1f0   : > { %vm915_vm12 = vcmp.ge.f32.partialorder %v912_v20, 0.0  ;;  %v918_v22 = vmul.f32 0.2, %v912_v20 }
 0x1f2   : > { %v921_v24 = vsel %vm915_vm12, %v912_v20, %v918_v22 }
 0x1f3   : > { %v923_v25 = vpack.c.bf16 %v921_v24, %v920_v23 }
 0x1f5   : > { %925 = vst [vmem:[%s332_s15] sm:$0xff] %v923_v25 }
 0x1f6 PF: > { %s17_s24 = sadd.s32 1, %s1200_s24  }
 0x1f7   : > { %p14_p4 = scmp.ge.s32.totalorder %s17_s24, 4  }
 0x1f9   :  { %16 = sbr.rel (!%p14_p4) target bundleno = 1 (0x1), region = 87 }

// kernel: generator_block_forward.4
= control target key start
LH: loop header
LB: loop body
LE: loop exit
PB: predicated region body
PF: predicated region fallthrough
CT: control target
= control target key end

     0   :  { %s1579_s17 = smov 0   ;;  %s1718_s0 = inlined_call_operand.vmem [shape: f32[2,16,1], index: 0, kind: input, shape index: {}]   ;;  %s1719_s1 = inlined_call_operand.vmem [shape: f32[2,8,1], index: 1, kind: input, shape index: {}]   ;;  %s1720_s2 = inlined_call_operand.vmem [shape: f32[2,1,384], index: 2, kind: input, shape index: {}]   ;;  %s1721_s3 = inlined_call_operand.vmem [shape: f32[8,1], index: 3, kind: input, shape index: {}]   ;;  %s1722_s4 = inlined_call_operand.vmem [shape: f32[8,1], index: 4, kind: input, shape index: {}]   ;;  %s1723_s5 = inlined_call_operand.vmem [shape: bf16[2,16,512], index: 5, kind: input, shape index: {}]   ;;  %s1724_s6 = inlined_call_operand.vmem [shape: bf16[8,144], index: 6, kind: input, shape index: {}]   ;;  %s1725_s7 = inlined_call_operand.vmem [shape: f32[2,8,1], index: 7, kind: input, shape index: {}]   ;;  %s1726_s8 = inlined_call_operand.vmem [shape: bf16[3,8], index: 8, kind: input, shape index: {}]   ;;  %s1727_s9 = inlined_call_operand.vmem [shape: f32[2,3,384], index: 9, kind: input, shape index: {}]   ;;  %s1728_s10 = inlined_call_operand.vmem [shape: bf16[2,8,384], index: 10, kind: output, shape index: {0}]   ;;  %s1729_s11 = inlined_call_operand.vmem [shape: f32[2,3,384], index: 11, kind: output, shape index: {1}]  }
   0x1 LB: > { %s1319_s18 = sadd.s32 4294967295, %s1507_s17   ;;  %p1323_p0 = scmp.ge.s32.totalorder %s1507_s17, 1  ;;  %s1507_s17 = sphi %s1579_s17, %s22_s17  }
   0x2   : > { %p387_p1 = scmp.lt.s32.totalorder %s1507_s17, 3 }
   0x4   : > { %p388_p2 = pnand %p1323_p0, %p387_p1 }
   0x5   : > { %p454_p3 = scmp.lt.s32.totalorder (!%p388_p2), %s1319_s18, 1  ;;  %s1511_s27 = smov (!%p388_p2), 92  }
   0x6   : > { %391 = sbr.rel (%p388_p2) target bundleno = 641 (0x281), region = 60  ;;  %s1512_s28 = smov (!%p388_p2), 91  }
   0x7   : > { %s1513_s29 = smov (!%p388_p2), 90   ;;  %s1514_s30 = smov (!%p388_p2), 108  }
   0x8   : > { %s1515_s12 = smov (!%p388_p2), 109   ;;  %s1516_s13 = smov (!%p388_p2), 110  }
   0x9   : > { %s1517_s14 = smov (!%p388_p2), 126   ;;  %s1518_s15 = smov (!%p388_p2), 127  }
   0xb   : > { %v1509_v0 = vmov 0   ;;  %s1731_s18 = smov (!%p454_p3, %s1319_s18), 1  ;;  %v1510_v5 = vmov 839922192   ;;  %v1063_v38 = vld [vmem:[%s1722_s4] sm:$0xff]  ;;  %vm560_vm0 = vcmask 1043456  }
   0xc   : > { %1498 = vset.pattern.permute.xlu0 %v1509_v0  ;;  %1499 = vset.pattern.permute.xlu1 %v1509_v0  ;;  %s1449_s19 = sshll.u32 %s1731_s18, 4  ;;  %s1450_s23 = sshll.u32 %s1731_s18, 5  ;;  %v506_v6 = vunpack.c.l.s4 %v1510_v5  ;;  %vm724_vm1 = vcmask 744448   ;;  %vm751_vm2 = vcmask 736256   ;;  %vm697_vm3 = vcmask 752640  }
   0xd   : > { %1500 = vset.pattern.permute.xlu2 %v1509_v0  ;;  %s458_s22 = scalar_lea.vmem %s1718_s0, %s1449_s19  ;;  %s471_s26 = scalar_lea.vmem %s1723_s5, %s1450_s23  ;;  %vm670_vm4 = vcmask 883712   ;;  %vm643_vm5 = vcmask 891904   ;;  %vm616_vm6 = vcmask 900096   ;;  %vm952_vm7 = vcmask 130048  }
   0xe   : > { %v496_v1 = vld [vmem:[%s458_s22] sm:$0xff]  ;;  %v497_v3 = vld [vmem:[%s458_s22 + $0x8] sm:$0xff]  ;;  %v507_v8 = vunpack.c.0.s8 %v506_v6  ;;  %v494_v21 = vld [vmem:[%s471_s26 + $0x10] sm:$0xff]  ;;  %vm589_vm8 = vcmask 1031168   ;;  %s1326_s22 = sshll.u32 %s1731_s18, 3  ;;  %vm562_vm9 = vcmask 1039360  }
   0xf   : > { %v498_v2 = vpack.c.bf16 %v496_v1, %v496_v1  ;;  %v499_v4 = vpack.c.bf16 %v497_v3, %v497_v3  ;;  %v492_v7 = vld [vmem:[%s471_s26] sm:$0xff]  ;;  %v493_v9 = vld [vmem:[%s471_s26 + $0x8] sm:$0xff]  ;;  %v495_v22 = vld [vmem:[%s471_s26 + $0x18] sm:$0xff]  ;;  %v522_v25 = vunpack.c.l.bf16 %v494_v21  ;;  %v523_v27 = vunpack.c.h.bf16 %v494_v21  ;;  %s462_s25 = scalar_lea.vmem %s1719_s1, %s1326_s22  ;;  %s1478_s16 = smul.u32 3, %s1731_s18 }
  0x10   : > { %v518_v10 = vunpack.c.l.bf16 %v492_v7  ;;  %v519_v12 = vunpack.c.h.bf16 %v492_v7  ;;  %v520_v13 = vunpack.c.l.bf16 %v493_v9  ;;  %v521_v14 = vunpack.c.h.bf16 %v493_v9 }
  0x11   : > { %502 = vperm.xlu0 %1498, %v498_v2   ;;  %v524_v28 = vunpack.c.l.bf16 %v495_v22  ;;  %v525_v29 = vunpack.c.h.bf16 %v495_v22  ;;  %s466_s21 = scalar_lea.vmem %s1720_s2, %s1478_s16  ;;  %vm1111_vm13 = vcmask 64512  }
  0x19   : > { %511 = vperm.xlu0 %1498, %v499_v4  }
  0x83   : > { %v503_v11 = vpop.permute.xlu0 %502 }
  0x84   : > { %v508_v15 = vperm.slane %v503_v11, %v507_v8 }
  0x86   : > { %v526_v16 = vunpack.c.l.bf16 %v508_v15 }
  0x88   : > { %v528_v17 = vmul.f32 %v526_v16, %v518_v10  ;;  %v529_v18 = vmul.f32 %v526_v16, %v519_v12  ;;  %v530_v19 = vmul.f32 %v526_v16, %v520_v13  ;;  %v531_v20 = vmul.f32 %v526_v16, %v521_v14 }
  0x8a   : > { %v536_v23 = vpack.c.bf16 %v529_v18, %v528_v17  ;;  %v537_v24 = vpack.c.bf16 %v531_v20, %v530_v19 }
  0x8b   : > { %v512_v26 = vpop.permute.xlu0 %511 }
  0x8c   : > { %540 = vst [vmem:[#allocation2] sm:$0xff] %v536_v23  ;;  %v517_v30 = vperm.slane %v512_v26, %v507_v8  ;;  %684 = vrot.lane.b32.xlu0 %v536_v23, %s1511_s27  ;;  %711 = vrot.lane.b32.xlu1 %v536_v23, %s1512_s28 }
  0x8d   : > { %541 = vst [vmem:[#allocation2 + $0x8] sm:$0xf] %v537_v24 }
  0x8e   : > { %v527_v31 = vunpack.c.l.bf16 %v517_v30 }
  0x90   : > { %v532_v32 = vmul.f32 %v527_v31, %v522_v25  ;;  %v533_v33 = vmul.f32 %v527_v31, %v523_v27  ;;  %v534_v34 = vmul.f32 %v527_v31, %v524_v28  ;;  %v535_v35 = vmul.f32 %v527_v31, %v525_v29 }
  0x92   : > { %v538_v36 = vpack.c.bf16 %v533_v33, %v532_v32  ;;  %v539_v37 = vpack.c.bf16 %v535_v35, %v534_v34 }
  0x94   : > { %542 = vst [vmem:[#allocation2 + $0xc] sm:$0xff] %v538_v36  ;;  %713 = vrot.lane.b32.xlu1 %v537_v24, %s1512_s28  ;;  %690 = vrot.lane.b32.xlu0 %v539_v37, %s1511_s27 }
  0x95   : > { %543 = vst [vmem:[#allocation2 + $0x14] sm:$0xf] %v539_v37  ;;  %715 = vrot.lane.b32.xlu2 %v538_v36, %s1512_s28 }
  0x9c   : > { %686 = vrot.lane.b32.xlu1 %v537_v24, %s1511_s27  ;;  %742 = vrot.lane.b32.xlu0 %v538_v36, %s1513_s29 }
  0x9d   : > { %717 = vrot.lane.b32.xlu2 %v539_v37, %s1512_s28 }
  0xa4   : > { %738 = vrot.lane.b32.xlu1 %v536_v23, %s1513_s29  ;;  %659 = vrot.lane.b32.xlu0 %v537_v24, %s1514_s30 }
  0xa5   : > { %688 = vrot.lane.b32.xlu2 %v538_v36, %s1511_s27 }
  0xac   : > { %744 = vrot.lane.b32.xlu1 %v539_v37, %s1513_s29  ;;  %630 = vrot.lane.b32.xlu0 %v536_v23, %s1515_s12 }
  0xad   : > { %740 = vrot.lane.b32.xlu2 %v537_v24, %s1513_s29 }
  0xb4   : > { %661 = vrot.lane.b32.xlu1 %v538_v36, %s1514_s30  ;;  %636 = vrot.lane.b32.xlu0 %v539_v37, %s1515_s12 }
  0xb5   : > { %657 = vrot.lane.b32.xlu2 %v536_v23, %s1514_s30 }
  0xbc   : > { %632 = vrot.lane.b32.xlu1 %v537_v24, %s1515_s12  ;;  %607 = vrot.lane.b32.xlu0 %v538_v36, %s1516_s13 }
  0xbd   : > { %663 = vrot.lane.b32.xlu2 %v539_v37, %s1514_s30  ;;  %s475_s30 = scalar_lea.vmem %s1725_s7, %s1326_s22 }
  0xc4   : > { %603 = vrot.lane.b32.xlu1 %v536_v23, %s1516_s13  ;;  %578 = vrot.lane.b32.xlu0 %v537_v24, %s1517_s14 }
  0xc5   : > { %634 = vrot.lane.b32.xlu2 %v538_v36, %s1515_s12  ;;  %s1690_s12 = smul.u32 12, %s1731_s18 }
  0xc7   : > { %s485_s23 = scalar_lea.vmem %s1728_s10, %s1690_s12  ;;  %s490_s28 = scalar_lea.vmem %s1729_s11, %s1690_s12 }
  0xcc   : > { %609 = vrot.lane.b32.xlu1 %v539_v37, %s1516_s13  ;;  %548 = vrot.lane.b32.xlu0 %v536_v23, %s1518_s15 }
  0xcd   : > { %605 = vrot.lane.b32.xlu2 %v537_v24, %s1516_s13 }
  0xd4   : > { %580 = vrot.lane.b32.xlu1 %v538_v36, %s1517_s14  ;;  %554 = vrot.lane.b32.xlu0 %v539_v37, %s1518_s15 }
  0xd5   : > { %576 = vrot.lane.b32.xlu2 %v536_v23, %s1517_s14 }
  0xdc   : > { %550 = vrot.lane.b32.xlu1 %v537_v24, %s1518_s15  ;;  %1066 = vperm.xlu0 %1498, %v1063_v38  }
  0xdd   : > { %582 = vrot.lane.b32.xlu2 %v539_v37, %s1517_s14 }
  0xe5   : > { %552 = vrot.lane.b32.xlu2 %v538_v36, %s1518_s15  ;;  %s480_s15 = scalar_lea.vmem %s1727_s9, %s1690_s12 }
  0xef   : > { %v716_v39 = vpop.permute.xlu2 %715 }
  0xf0   : > { %v721_v41 = vrot.slane %v716_v39, 4 }
  0xf7   : > { %v718_v40 = vpop.permute.xlu2 %717 }
  0xf8   : > { %v722_v42 = vrot.slane %v718_v40, 4 }
  0xfa   : > { %v727_v43 = vsel %vm560_vm0, %v721_v41, %v722_v42  ;;  %v729_v44 = vsel %vm724_vm1, %v718_v40, %v722_v42  ;;  %v1627_v41 = vld [vmem:[%s1724_s6] sm:$0xff] }
  0xfb   : > { %v728_v45 = vsel %vm724_vm1, %v716_v39, %v727_v43  ;;  %737 = vst [vmem:[#allocation2 + $0xbc] sm:$0xf] %v729_v44 }
  0xfc   : > { %736 = vst [vmem:[#allocation2 + $0xb4] sm:$0xff] %v728_v45 }
  0xfe   : > { %v712_v46 = vpop.permute.xlu1 %711  ;;  %v685_v47 = vpop.permute.xlu0 %684 }
  0xff   : > { %v689_v48 = vpop.permute.xlu2 %688  ;;  %v719_v51 = vrot.slane %v712_v46, 4  ;;  %v692_v2 = vrot.slane %v685_v47, 4 }
 0x100   : > { %v694_v52 = vrot.slane %v689_v48, 4 }
 0x103   : > { %v1473_v7 = vld [vmem:[#allocation2 + $0xb0] sm:$0xf0]  ;;  %v1421_v8 = vld [vmem:[#allocation2 + $0xb4] sm:$0xf0] }
 0x106   : > { %v714_v49 = vpop.permute.xlu1 %713  ;;  %v691_v50 = vpop.permute.xlu0 %690 }
 0x107   : > { %v720_v53 = vrot.slane %v714_v49, 4  ;;  %v741_v54 = vpop.permute.xlu2 %740  ;;  %v695_v55 = vrot.slane %v691_v50, 4 }
 0x108   : > { %v747_v56 = vrot.slane %v741_v54, 4 }
 0x109   : > { %v723_v57 = vsel %vm560_vm0, %v719_v51, %v720_v53  ;;  %v726_v58 = vsel %vm724_vm1, %v714_v49, %v720_v53  ;;  %v700_v59 = vsel %vm560_vm0, %v694_v52, %v695_v55  ;;  %v702_v63 = vsel %vm697_vm3, %v691_v50, %v695_v55 }
 0x10a   : > { %v725_v60 = vsel %vm724_vm1, %v712_v46, %v723_v57  ;;  %735 = vst [vmem:[#allocation2 + $0xb0] sm:$0xf] %v726_v58  ;;  %v753_v61 = vsel %vm751_vm2, %v741_v54, %v747_v56  ;;  %v701_v62 = vsel %vm697_vm3, %v689_v48, %v700_v59  ;;  %v804_v50 = vunpack.c.h.b16 %v1627_v41 }
 0x10b   : > { %734 = vst [vmem:[#allocation2 + $0xa8] sm:$0xff] %v725_v60 }
 0x10c   : > { %762 = vst [vmem:[#allocation2 + $0xc8] sm:$0xf] %v753_v61 }
 0x10d   : > { %709 = vst [vmem:[#allocation2 + $0x9c] sm:$0xff] %v701_v62 }
 0x10e   : > { %710 = vst [vmem:[#allocation2 + $0xa4] sm:$0xf] %v702_v63  ;;  %v687_v0 = vpop.permute.xlu1 %686  ;;  %v743_v1 = vpop.permute.xlu0 %742 }
 0x10f   : > { %v693_v3 = vrot.slane %v687_v0, 4  ;;  %v658_v4 = vpop.permute.xlu2 %657  ;;  %v748_v35 = vrot.slane %v743_v1, 4 }
 0x110   : > { %v665_v16 = vrot.slane %v658_v4, 4 }
 0x111   : > { %v696_v5 = vsel %vm560_vm0, %v692_v2, %v693_v3  ;;  %v699_v6 = vsel %vm697_vm3, %v687_v0, %v693_v3  ;;  %v1427_v49 = vld [vmem:[#allocation2 + $0xb0] sm:$0xf]  ;;  %v1474_v0 = vld [vmem:[#allocation2 + $0xb8] sm:$0xf0] }
 0x112   : > { %v698_v9 = vsel %vm697_vm3, %v685_v47, %v696_v5  ;;  %708 = vst [vmem:[#allocation2 + $0x98] sm:$0xf] %v699_v6  ;;  %v1419_v10 = vld [vmem:[#allocation2 + $0xa8] sm:$0xf]  ;;  %v1472_v11 = vld [vmem:[#allocation2 + $0xac] sm:$0xf]  ;;  %v1428_v2 = vor.u32 %v1474_v0, %v1427_v49 }
 0x113   : > { %707 = vst [vmem:[#allocation2 + $0x90] sm:$0xff] %v698_v9  ;;  %v1420_v12 = vor.u32 %v1473_v7, %v1419_v10  ;;  %v1424_v13 = vor.u32 %v1472_v11, %v1421_v8 }
 0x114   : > { %v1470_v24 = vld [vmem:[#allocation2 + $0x98] sm:$0xf0]  ;;  %v1409_v25 = vld [vmem:[#allocation2 + $0x9c] sm:$0xf0] }
 0x115   : > { %956 = vmatpush.bf16.msra.mxu0 %v1420_v12  ;;  %982 = vmatpush.bf16.msra.mxu2 %v1424_v13  ;;  %v1471_v11 = vld [vmem:[#allocation2 + $0xa0] sm:$0xf0] }
 0x116   : > { %v739_v14 = vpop.permute.xlu1 %738  ;;  %v660_v15 = vpop.permute.xlu0 %659 }
 0x117   : > { %v746_v17 = vrot.slane %v739_v14, 4  ;;  %v664_v18 = vpop.permute.xlu2 %663  ;;  %v666_v19 = vrot.slane %v660_v15, 4 }
 0x118   : > { %v668_v20 = vrot.slane %v664_v18, 4 }
 0x119   : > { %v750_v21 = vsel %vm560_vm0, %v746_v17, %v747_v56  ;;  %v669_v22 = vsel %vm560_vm0, %v665_v16, %v666_v19  ;;  %v672_v23 = vsel %vm670_vm4, %v660_v15, %v666_v19  ;;  %v1415_v5 = vld [vmem:[#allocation2 + $0x98] sm:$0xf] }
 0x11a   : > { %v752_v26 = vsel %vm751_vm2, %v739_v14, %v750_v21  ;;  %v675_v27 = vsel %vm670_vm4, %v664_v18, %v668_v20  ;;  %v671_v28 = vsel %vm670_vm4, %v658_v4, %v669_v22  ;;  %681 = vst [vmem:[#allocation2 + $0x80] sm:$0xf] %v672_v23  ;;  %v1407_v29 = vld [vmem:[#allocation2 + $0x90] sm:$0xf]  ;;  %v1469_v30 = vld [vmem:[#allocation2 + $0x94] sm:$0xf]  ;;  %v1642_v4 = vpack.c.b16 %v804_v50, %v804_v50 }
 0x11b   : > { %761 = vst [vmem:[#allocation2 + $0xc0] sm:$0xff] %v752_v26  ;;  %v1408_v31 = vor.u32 %v1470_v24, %v1407_v29  ;;  %v1412_v32 = vor.u32 %v1469_v30, %v1409_v25  ;;  %v1416_v12 = vor.u32 %v1471_v11, %v1415_v5 }
 0x11c   : > { %683 = vst [vmem:[#allocation2 + $0x8c] sm:$0xf] %v675_v27 }
 0x11d   : > { %680 = vst [vmem:[#allocation2 + $0x78] sm:$0xff] %v671_v28  ;;  %957 = vmatpush.bf16.msra.mxu0 %v1408_v31  ;;  %983 = vmatpush.bf16.msra.mxu2 %v1412_v32 }
 0x11e   : > { %v745_v33 = vpop.permute.xlu1 %744  ;;  %v1619_v34 = vpop.permute.xlu0 %630 }
 0x11f   : > { %v749_v36 = vrot.slane %v745_v33, 4  ;;  %v635_v37 = vpop.permute.xlu2 %634  ;;  %v638_v8 = vrot.slane %v1619_v34, 4 }
 0x120   : > { %v640_v44 = vrot.slane %v635_v37, 4 }
 0x121   : > { %v754_v38 = vsel %vm560_vm0, %v748_v35, %v749_v36  ;;  %v756_v39 = vsel %vm751_vm2, %v745_v33, %v749_v36  ;;  %v1403_v13 = vld [vmem:[#allocation2 + $0x80] sm:$0xf] }
 0x122   : > { %v755_v40 = vsel %vm751_vm2, %v743_v1, %v754_v38  ;;  %764 = vst [vmem:[#allocation2 + $0xd4] sm:$0xf] %v756_v39  ;;  %v1431_v54 = vld [vmem:[#allocation2 + $0xc0] sm:$0xf]  ;;  %v1475_v55 = vld [vmem:[#allocation2 + $0xc4] sm:$0xf] }
 0x123   : > { %763 = vst [vmem:[#allocation2 + $0xcc] sm:$0xff] %v755_v40  ;;  %v1439_v1 = vld [vmem:[#allocation2 + $0xc8] sm:$0xf]  ;;  %v1468_v18 = vld [vmem:[#allocation2 + $0x88] sm:$0xf0] }
 0x124   : > { %v1395_v16 = vld [vmem:[#allocation2 + $0x78] sm:$0xf]  ;;  %v1466_v17 = vld [vmem:[#allocation2 + $0x7c] sm:$0xf]  ;;  %v1404_v24 = vor.u32 %v1468_v18, %v1403_v13 }
 0x126   : > { %v662_v42 = vpop.permute.xlu1 %661  ;;  %v637_v43 = vpop.permute.xlu0 %636 }
 0x127   : > { %v667_v45 = vrot.slane %v662_v42, 4  ;;  %v1629_v46 = vpop.permute.xlu2 %605  ;;  %v641_v47 = vrot.slane %v637_v43, 4 }
 0x128   : > { %v612_v48 = vrot.slane %v1629_v46, 4 }
 0x129   : > { %v673_v51 = vsel %vm560_vm0, %v667_v45, %v668_v20  ;;  %v646_v52 = vsel %vm560_vm0, %v640_v44, %v641_v47  ;;  %v648_v53 = vsel %vm643_vm5, %v637_v43, %v641_v47  ;;  %v1477_v56 = vld [vmem:[#allocation2 + $0xd0] sm:$0xf0] }
 0x12a   : > { %v674_v57 = vsel %vm670_vm4, %v662_v42, %v673_v51  ;;  %v618_v58 = vsel %vm616_vm6, %v1629_v46, %v612_v48  ;;  %v647_v59 = vsel %vm643_vm5, %v635_v37, %v646_v52  ;;  %656 = vst [vmem:[#allocation2 + $0x74] sm:$0xf] %v648_v53  ;;  %v1476_v60 = vld [vmem:[#allocation2 + $0xc8] sm:$0xf0]  ;;  %v1433_v61 = vld [vmem:[#allocation2 + $0xcc] sm:$0xf0]  ;;  %v1440_v3 = vor.u32 %v1477_v56, %v1439_v1 }
 0x12b   : > { %682 = vst [vmem:[#allocation2 + $0x84] sm:$0xff] %v674_v57  ;;  %v1432_v62 = vor.u32 %v1476_v60, %v1431_v54  ;;  %v1436_v63 = vor.u32 %v1475_v55, %v1433_v61  ;;  %v1034_v56 = vld [vmem:[%s462_s25] sm:$0xff] }
 0x12c   : > { %627 = vst [vmem:[#allocation2 + $0x50] sm:$0xf] %v618_v58  ;;  %1037 = vperm.xlu1 %1499, %v1034_v56   ;;  %v1044_v57 = vld [vmem:[%s1721_s3] sm:$0xff] }
 0x12d   : > { %655 = vst [vmem:[#allocation2 + $0x6c] sm:$0xff] %v647_v59  ;;  %976 = vmatpush.bf16.msra.mxu1 %v1432_v62  ;;  %1002 = vmatpush.bf16.msra.mxu3 %v1436_v63 }
 0x12e   : > { %v633_v6 = vpop.permute.xlu1 %632  ;;  %v1644_v7 = vpop.permute.xlu0 %607  ;;  %1054 = vperm.xlu2 %1500, %v1044_v57   ;;  %v1043_v57 = vld [vmem:[%s466_s21] sm:$0x7] }
 0x12f   : > { %v639_v9 = vrot.slane %v633_v6, 4  ;;  %v577_v10 = vpop.permute.xlu2 %576  ;;  %v613_v50 = vrot.slane %v1644_v7, 4 }
 0x130   : > { %1442 = vmatmul.msk.bf16.vlgmr.msra.gmra.mxu3 %vm952_vm7, %v1642_v4  ;;  %1441 = vmatmul.msk.bf16.vlgmr.msra.gmra.mxu1 %vm952_vm7, %v1642_v4  ;;  %v584_v27 = vrot.slane %v577_v10, 4 }
 0x131   : > { %1008 = vmatpush.bf16.msrb.mxu1 %v1428_v2  ;;  %1028 = vmatpush.bf16.msrb.mxu3 %v1440_v3  ;;  %v642_v14 = vsel %vm560_vm0, %v638_v8, %v639_v9  ;;  %v645_v15 = vsel %vm643_vm5, %v633_v6, %v639_v9  ;;  %v1465_v32 = vld [vmem:[#allocation2 + $0x70] sm:$0xf0] }
 0x132   : > { %v644_v19 = vsel %vm643_vm5, %v1619_v34, %v642_v14  ;;  %654 = vst [vmem:[#allocation2 + $0x68] sm:$0xf] %v645_v15  ;;  %v1467_v20 = vld [vmem:[#allocation2 + $0x80] sm:$0xf0]  ;;  %v1397_v21 = vld [vmem:[#allocation2 + $0x84] sm:$0xf0] }
 0x133   : > { %653 = vst [vmem:[#allocation2 + $0x60] sm:$0xff] %v644_v19  ;;  %v1396_v22 = vor.u32 %v1467_v20, %v1395_v16  ;;  %v1400_v23 = vor.u32 %v1466_v17, %v1397_v21  ;;  %v1379_v63 = vld [vmem:[#allocation2 + $0x50] sm:$0xf]  ;;  %v1085_v15 = vld [vmem:[%s475_s30] sm:$0xff] }
 0x134   : > { %v1464_v37 = vld [vmem:[#allocation2 + $0x68] sm:$0xf0]  ;;  %v1385_v38 = vld [vmem:[#allocation2 + $0x6c] sm:$0xf0]  ;;  %1088 = vperm.xlu1 %1499, %v1085_v15  }
 0x135   : > { %1009 = vmatpush.bf16.msrb.mxu1 %v1416_v12  ;;  %958 = vmatpush.bf16.msra.mxu0 %v1396_v22 }
 0x136   : > { %984 = vmatpush.bf16.msra.mxu2 %v1400_v23  ;;  %v604_v25 = vpop.permute.xlu1 %603  ;;  %v579_v26 = vpop.permute.xlu0 %578 }
 0x137   : > { %v611_v28 = vrot.slane %v604_v25, 4  ;;  %v583_v29 = vpop.permute.xlu2 %582  ;;  %v585_v30 = vrot.slane %v579_v26, 4 }
 0x138   : > { %v587_v31 = vrot.slane %v583_v29, 4 }
 0x139   : > { %1010 = vmatpush.bf16.msrb.mxu1 %v1404_v24  ;;  %v615_v33 = vsel %vm560_vm0, %v611_v28, %v612_v48  ;;  %v588_v34 = vsel %vm560_vm0, %v584_v27, %v585_v30  ;;  %v591_v35 = vsel %vm589_vm8, %v579_v26, %v585_v30  ;;  %v1391_v36 = vld [vmem:[#allocation2 + $0x68] sm:$0xf] }
 0x13a   : > { %v617_v39 = vsel %vm616_vm6, %v604_v25, %v615_v33  ;;  %v594_v40 = vsel %vm589_vm8, %v583_v29, %v587_v31  ;;  %v590_v42 = vsel %vm589_vm8, %v577_v10, %v588_v34  ;;  %600 = vst [vmem:[#allocation2 + $0x38] sm:$0xf] %v591_v35  ;;  %v1392_v43 = vor.u32 %v1465_v32, %v1391_v36  ;;  %v1383_v44 = vld [vmem:[#allocation2 + $0x60] sm:$0xf]  ;;  %v1463_v45 = vld [vmem:[#allocation2 + $0x64] sm:$0xf] }
 0x13b   : > { %626 = vst [vmem:[#allocation2 + $0x48] sm:$0xff] %v617_v39  ;;  %v1384_v46 = vor.u32 %v1464_v37, %v1383_v44  ;;  %v1388_v47 = vor.u32 %v1463_v45, %v1385_v38  ;;  %v1453_v38 = vld [vmem:[#allocation2 + $0x10] sm:$0xf0]  ;;  %v803_v39 = vunpack.c.l.b16 %v1627_v41  ;;  %v1335_v45 = vld [vmem:[#allocation2] sm:$0xf] }
 0x13c   : > { %602 = vst [vmem:[#allocation2 + $0x44] sm:$0xf] %v594_v40  ;;  %v1452_v40 = vld [vmem:[#allocation2 + $0x8] sm:$0xf0] }
 0x13d   : > { %1011 = vmatpush.bf16.msrb.mxu1 %v1392_v43  ;;  %599 = vst [vmem:[#allocation2 + $0x30] sm:$0xff] %v590_v42  ;;  %959 = vmatpush.bf16.msra.mxu0 %v1384_v46  ;;  %v1337_v42 = vld [vmem:[#allocation2 + $0xc] sm:$0xf0]  ;;  %v1343_v43 = vld [vmem:[#allocation2 + $0x8] sm:$0xf] }
 0x13e   : > { %985 = vmatpush.bf16.msra.mxu2 %v1388_v47  ;;  %v610_v48 = vpop.permute.xlu1 %609  ;;  %v549_v49 = vpop.permute.xlu0 %548  ;;  %v1344_v44 = vor.u32 %v1453_v38, %v1343_v43  ;;  %v1451_v46 = vld [vmem:[#allocation2 + $0x4] sm:$0xf]  ;;  %v1336_v47 = vor.u32 %v1452_v40, %v1335_v45 }
 0x13f   : > { %v614_v51 = vrot.slane %v610_v48, 4  ;;  %v553_v55 = vpop.permute.xlu2 %552  ;;  %v556_v18 = vrot.slane %v549_v49, 4 }
 0x140   : > { %1443 = vmatmul.msk.bf16.vlgmr.msrb.gmra.mxu3 %vm952_vm7, %v1642_v4  ;;  %v558_v60 = vrot.slane %v553_v55, 4 }
 0x141   : > { %v619_v52 = vsel %vm560_vm0, %v613_v50, %v614_v51  ;;  %v621_v53 = vsel %vm616_vm6, %v610_v48, %v614_v51  ;;  %v1367_v13 = vld [vmem:[#allocation2 + $0x38] sm:$0xf]  ;;  %v1340_v48 = vor.u32 %v1451_v46, %v1337_v42 }
 0x142   : > { %v620_v54 = vsel %vm616_vm6, %v1644_v7, %v619_v52  ;;  %629 = vst [vmem:[#allocation2 + $0x5c] sm:$0xf] %v621_v53  ;;  %v1371_v4 = vld [vmem:[#allocation2 + $0x48] sm:$0xf]  ;;  %v1460_v5 = vld [vmem:[#allocation2 + $0x4c] sm:$0xf] }
 0x143   : > { %628 = vst [vmem:[#allocation2 + $0x54] sm:$0xff] %v620_v54  ;;  %v1459_v14 = vld [vmem:[#allocation2 + $0x40] sm:$0xf0]  ;;  %v1098_v54 = vld [vmem:[%s480_s15] sm:$0x77] }
 0x144   : > { %v1368_v17 = vor.u32 %v1459_v14, %v1367_v13  ;;  %v1359_v22 = vld [vmem:[#allocation2 + $0x30] sm:$0xf]  ;;  %v1457_v23 = vld [vmem:[#allocation2 + $0x34] sm:$0xf]  ;;  %1102 = vst [vmem:[#allocation1] ss:$2 sm:$0xff] %v1098_v54 }
 0x146   : > { %v581_v58 = vpop.permute.xlu1 %580  ;;  %v555_v59 = vpop.permute.xlu0 %554 }
 0x147   : > { %v586_v61 = vrot.slane %v581_v58, 4  ;;  %v559_v62 = vrot.slane %v555_v59, 4 }
 0x149   : > { %v592_v0 = vsel %vm560_vm0, %v586_v61, %v587_v31  ;;  %v565_v1 = vsel %vm560_vm0, %v558_v60, %v559_v62  ;;  %v567_v2 = vsel %vm562_vm9, %v555_v59, %v559_v62  ;;  %v1462_v3 = vld [vmem:[#allocation2 + $0x58] sm:$0xf0]  ;;  %v1046_v59 = vperm.slane %v1043_v57, 0 }
 0x14a   : > { %v593_v6 = vsel %vm589_vm8, %v581_v58, %v592_v0  ;;  %v566_v7 = vsel %vm562_vm9, %v553_v55, %v565_v1  ;;  %575 = vst [vmem:[#allocation2 + $0x2c] sm:$0xf] %v567_v2  ;;  %v1380_v8 = vor.u32 %v1462_v3, %v1379_v63  ;;  %v1461_v9 = vld [vmem:[#allocation2 + $0x50] sm:$0xf0]  ;;  %v1373_v10 = vld [vmem:[#allocation2 + $0x54] sm:$0xf0] }
 0x14b   : > { %601 = vst [vmem:[#allocation2 + $0x3c] sm:$0xff] %v593_v6  ;;  %v1372_v11 = vor.u32 %v1461_v9, %v1371_v4  ;;  %v1376_v12 = vor.u32 %v1460_v5, %v1373_v10  ;;  %v1099_v55 = vld [vmem:[%s480_s15 + $0x8] sm:$0x7]  ;;  %v1048_v58 = vperm.slane %v1043_v57, 2 }
 0x14c   : > { %574 = vst [vmem:[#allocation2 + $0x24] sm:$0xff] %v566_v7  ;;  %1012 = vmatpush.bf16.msrb.mxu1 %v1380_v8  ;;  %v1047_v8 = vperm.slane %v1043_v57, 1  ;;  %v1106_v42 = vld.sshfl [vmem:[#allocation1 + $0x8] sm:$0xff pattern:$0x75316420] }
 0x14d   : > { %960 = vmatpush.bf16.msra.mxu0 %v1372_v11  ;;  %986 = vmatpush.bf16.msra.mxu2 %v1376_v12  ;;  %1104 = vst [vmem:[#allocation1 + $0x10] ss:$2 sm:$0xff] %v1099_v55 }
 0x14e   : > { %v551_v16 = vpop.permute.xlu1 %550  ;;  %v1067_v7 = vpop.permute.xlu0 %1066 }
 0x14f   : > { %v557_v19 = vrot.slane %v551_v16, 4 }
 0x150   : > { %1013 = vmatpush.bf16.msrb.mxu1 %v1368_v17 }
 0x151   : > { %v561_v20 = vsel %vm560_vm0, %v556_v18, %v557_v19  ;;  %v564_v21 = vsel %vm562_vm9, %v551_v16, %v557_v19  ;;  %v1456_v30 = vld [vmem:[#allocation2 + $0x28] sm:$0xf0] }
 0x152   : > { %v563_v24 = vsel %vm562_vm9, %v549_v49, %v561_v20  ;;  %573 = vst [vmem:[#allocation2 + $0x20] sm:$0xf] %v564_v21  ;;  %v1458_v25 = vld [vmem:[#allocation2 + $0x38] sm:$0xf0]  ;;  %v1361_v26 = vld [vmem:[#allocation2 + $0x3c] sm:$0xf0]  ;;  %v805_v49 = vpack.c.b16 %v803_v39, %v803_v39 }
 0x153   : > { %572 = vst [vmem:[#allocation2 + $0x18] sm:$0xff] %v563_v24  ;;  %v1360_v27 = vor.u32 %v1458_v25, %v1359_v22  ;;  %v1364_v28 = vor.u32 %v1457_v23, %v1361_v26  ;;  %v1455_v31 = vld [vmem:[#allocation2 + $0x20] sm:$0xf0]  ;;  %v1349_v35 = vld [vmem:[#allocation2 + $0x24] sm:$0xf0] }
 0x154   : > { %v1107_v40 = vld.sshfl [vmem:[#allocation1 + $0x10] sm:$0xff pattern:$0x75316420] }
 0x155   : > { %961 = vmatpush.bf16.msra.mxu0 %v1360_v27  ;;  %987 = vmatpush.bf16.msra.mxu2 %v1364_v28 }
 0x159   : > { %v1355_v29 = vld [vmem:[#allocation2 + $0x20] sm:$0xf] }
 0x15a   : > { %v1356_v32 = vor.u32 %v1456_v30, %v1355_v29  ;;  %v1347_v33 = vld [vmem:[#allocation2 + $0x18] sm:$0xf]  ;;  %v1454_v34 = vld [vmem:[#allocation2 + $0x1c] sm:$0xf] }
 0x15b   : > { %v1348_v36 = vor.u32 %v1455_v31, %v1347_v33  ;;  %v1352_v37 = vor.u32 %v1454_v34, %v1349_v35  ;;  %v1097_v34 = vld [vmem:[%s1726_s8] sm:$0x3] }
 0x15c   : > { %1014 = vmatpush.bf16.msrb.mxu1 %v1356_v32 }
 0x15d   : > { %962 = vmatpush.bf16.msra.mxu0 %v1348_v36  ;;  %988 = vmatpush.bf16.msra.mxu2 %v1352_v37 }
 0x160   : > { %1015 = vmatpush.bf16.msrb.mxu1 %v1344_v44  ;;  %v1105_v44 = vld.sshfl [vmem:[#allocation1] sm:$0xff pattern:$0x75316420] }
 0x161   : > { %963 = vmatpush.bf16.msra.mxu0 %v1336_v47  ;;  %989 = vmatpush.bf16.msra.mxu2 %v1340_v48 }
 0x163   : > { %1016 = vmatmul.bf16.vlgmr.msrb.gmra.mxu1 %v805_v49 }
 0x164   : > { %964 = vmatmul.bf16.vlgmr.msra.gmra.mxu0 %v805_v49  ;;  %990 = vmatmul.bf16.vlgmr.msra.gmra.mxu2 %v805_v49 }
 0x188   : > { %v1055_v60 = vpop.permute.xlu2 %1054 }
 0x189   : > { %v1059_v1 = vmul.f32 %v1055_v60, %v1048_v58  ;;  %v1057_v3 = vmul.f32 %v1055_v60, %v1046_v59  ;;  %v1058_v17 = vmul.f32 %v1055_v60, %v1047_v8 }
 0x19e   : > { %v1038_v62 = vpop.permute.xlu1 %1037 }
 0x1a6   : > { %v1089_v20 = vpop.permute.xlu1 %1088 }
 0x1ad   : > { %v978_v41 = vpop.f32.mrf.mxu1 }
 0x1b3   : > { %v1004_v50 = vpop.f32.mrf.mxu3 }
 0x1b5   : > { %v980_v51 = vpop.f32.mrf.mxu1 }
 0x1bb   : > { %v1006_v52 = vpop.f32.mrf.mxu3 }
 0x1c3   : > { %v1030_v53 = vpop.f32.mrf.mxu3 }
 0x1cb   : > { %v1032_v56 = vpop.f32.mrf.mxu3 }
 0x1e0   : > { %v1017_v61 = vpop.f32.mrf.mxu1 }
 0x1e1   : > { %v1031_v63 = vadd.f32 %v1030_v53, %v1017_v61  ;;  %v965_v0 = vpop.f32.mrf.mxu0 }
 0x1e2   : > { %v979_v2 = vadd.f32 %v978_v41, %v965_v0 }
 0x1e3   : > { %v1042_v4 = vmul.f32 %v1038_v62, %v1031_v63 }
 0x1e4   : > { %v1040_v5 = vmul.f32 %v1038_v62, %v979_v2 }
 0x1e5   : > { %v1062_v6 = vadd.f32 %v1059_v1, %v1042_v4 }
 0x1e6   : > { %v1060_v9 = vadd.f32 %v1057_v3, %v1040_v5 }
 0x1e7   : > { %v1071_v10 = vadd.f32 %v1067_v7, %v1062_v6  ;;  %v991_v11 = vpop.f32.mrf.mxu2 }
 0x1e8   : > { %v1069_v12 = vadd.f32 %v1067_v7, %v1060_v9  ;;  %v1005_v13 = vadd.f32 %v1004_v50, %v991_v11  ;;  %v1019_v14 = vpop.f32.mrf.mxu1 }
 0x1e9   : > { %vm1074_vm10 = vcmp.ge.f32.partialorder %v1071_v10, 0.0  ;;  %v1077_v15 = vmul.f32 0.2, %v1071_v10  ;;  %v967_v16 = vpop.f32.mrf.mxu0 }
 0x1ea   : > { %vm1072_vm11 = vcmp.ge.f32.partialorder %v1069_v12, 0.0  ;;  %v1075_v18 = vmul.f32 0.2, %v1069_v12  ;;  %v1041_v19 = vmul.f32 %v1038_v62, %v1005_v13 }
 0x1eb   : > { %v1080_v21 = vsel %vm1074_vm10, %v1071_v10, %v1077_v15 }
 0x1ec   : > { %v1078_v22 = vsel %vm1072_vm11, %v1069_v12, %v1075_v18  ;;  %v1082_v23 = vpack.c.bf16 %v1080_v21, %v1080_v21  ;;  %v1093_v24 = vmul.f32 %v1089_v20, %v1080_v21  ;;  %v1061_v25 = vadd.f32 %v1058_v17, %v1041_v19 }
 0x1ed   : > { %v1091_v26 = vmul.f32 %v1089_v20, %v1078_v22 }
 0x1ee   : > { %1084 = vst [vmem:[%s485_s23 + $0x8] sm:$0xf] %v1082_v23  ;;  %v1096_v27 = vpack.c.bf16 %v1093_v24, %v1093_v24  ;;  %v1070_v28 = vadd.f32 %v1067_v7, %v1061_v25 }
 0x1ef   : > { %v1094_v29 = vpack.c.bf16 %v1091_v26, %v1091_v26  ;;  %v993_v30 = vpop.f32.mrf.mxu2 }
 0x1f0   : > { %v1123_v31 = vsel %vm560_vm0, %v1096_v27, 0  ;;  %vm1073_vm12 = vcmp.ge.f32.partialorder %v1070_v28, 0.0  ;;  %v1076_v32 = vmul.f32 0.2, %v1070_v28 }
 0x1f1   : > { %1158 = vmatpush.bf16.msrb.mxu2 %v1123_v31  ;;  %v1117_v33 = vsel %vm560_vm0, %v1094_v29, 0 }
 0x1f2   : > { %1132 = vmatpush.bf16.msra.mxu3 %v1117_v33  ;;  %v1079_v35 = vsel %vm1073_vm12, %v1070_v28, %v1076_v32 }
 0x1f3   : > { %v1081_v36 = vpack.c.bf16 %v1079_v35, %v1078_v22  ;;  %v1092_v37 = vmul.f32 %v1089_v20, %v1079_v35 }
 0x1f4   : > { %1446 = vmatmul.msk.bf16.vlgmr.msrb.gmra.mxu2 %vm1111_vm13, %v1097_v34 }
 0x1f5   : > { %1083 = vst [vmem:[%s485_s23] sm:$0xff] %v1081_v36  ;;  %v1095_v38 = vpack.c.bf16 %v1092_v37, %v1092_v37  ;;  %1444 = vmatmul.msk.bf16.vlgmr.msra.gmra.mxu3 %vm1111_vm13, %v1097_v34 }
 0x1f7   : > { %v1120_v39 = vsel %vm560_vm0, %v1095_v38, 0 }
 0x1f8   : > { %1145 = vmatpush.bf16.msrb.mxu0 %v1120_v39 }
 0x1fb   : > { %1445 = vmatmul.msk.bf16.vlgmr.msrb.gmra.mxu0 %vm1111_vm13, %v1097_v34 }
 0x277   : > { %v1160_v43 = vpop.f32.mrf.mxu2 }
 0x278   : > { %v1134_v45 = vpop.f32.mrf.mxu3  ;;  %v1147_v46 = vpop.f32.mrf.mxu0  ;;  %v1161_v47 = vadd.f32 %v1160_v43, %v1107_v40 }
 0x279   : > { %v1148_v48 = vadd.f32 %v1147_v46, %v1106_v42  ;;  %v1135_v49 = vadd.f32 %v1134_v45, %v1105_v44 }
 0x27a   : > { %1170 = vst [vmem:[%s490_s28 + $0x8] sm:$0x7] %v1161_v47 }
 0x27b   : > { %v1166_v41 = vrot.slane %v1148_v48, 4 }
 0x27d   : > { %v1167_v50 = vsel %vm560_vm0, %v1135_v49, %v1166_v41 }
 0x27e   : > { %1169 = vst [vmem:[%s490_s28] sm:$0x77] %v1167_v50 }
 0x27f   : > { %v1162_v51 = vpop.f32.mrf.mxu2 }
 0x280   : > { %v1136_v52 = vpop.f32.mrf.mxu3  ;;  %v1149_v53 = vpop.f32.mrf.mxu0 }
 0x281 PF: > { %s22_s17 = sadd.s32 1, %s1507_s17  }
 0x282   : > { %p19_p4 = scmp.ge.s32.totalorder %s22_s17, 4  }
 0x284   :  { %21 = sbr.rel (!%p19_p4) target bundleno = 1 (0x1), region = 118 }

// kernel: generator_block_forward.5
= control target key start
LH: loop header
LB: loop body
LE: loop exit
PB: predicated region body
PF: predicated region fallthrough
CT: control target
= control target key end

     0   :  { %s310_s12 = smov 127   ;;  %s311_s27 = smov 126   ;;  %vm58_vm0 = vcmask 1039360   ;;  %vm118_vm1 = vcmask 1031168   ;;  %vm198_vm2 = vcmask 769024   ;;  %vm256_vm3 = vcmask 490496   ;;  %s515_s0 = inlined_call_operand.vmem [shape: f32[6,1280], index: 0, kind: input, shape index: {}]   ;;  %s516_s1 = inlined_call_operand.vmem [shape: f32[6,1152], index: 1, kind: output, shape index: {}]  }
   0x1   :  { %v327_v0 = vld [vmem:[%s515_s0 + $0x10] sm:$0x3f]  ;;  %v8_v1 = vld [vmem:[%s515_s0] sm:$0x3f]  ;;  %v11_v6 = vld [vmem:[%s515_s0 + $0x18] sm:$0x3f] }
   0x2   :  { %v20_v2 = vmul.f32 2.0, %v327_v0  ;;  %v18_v3 = vmul.f32 2.0, %v8_v1  ;;  %v336_v4 = vld [vmem:[%s515_s0 + $0x20] sm:$0x3f]  ;;  %v9_v7 = vld [vmem:[%s515_s0 + $0x8] sm:$0x3f] }
   0x3   :  { %v22_v5 = vmul.f32 2.0, %v336_v4  ;;  %v348_v8 = vld [vmem:[%s515_s0 + $0x28] sm:$0x3f]  ;;  %v21_v9 = vmul.f32 2.0, %v11_v6  ;;  %v19_v10 = vmul.f32 2.0, %v9_v7  ;;  %s313_s28 = smov 94  }
   0x4   :  { %42 = vrot.lane.b32.xlu1 %v20_v2, %s310_s12  ;;  %38 = vrot.lane.b32.xlu0 %v18_v3, %s310_s12  ;;  %v23_v11 = vmul.f32 2.0, %v348_v8  ;;  %v354_v12 = vld [vmem:[%s515_s0 + $0x38] sm:$0x3f]  ;;  %v359_v13 = vld [vmem:[%s515_s0 + $0x30] sm:$0x3f] }
   0x5   :  { %46 = vrot.lane.b32.xlu2 %v22_v5, %s310_s12  ;;  %v364_v14 = vld [vmem:[%s515_s0 + $0x40] sm:$0x3f]  ;;  %v25_v15 = vmul.f32 2.0, %v354_v12  ;;  %v24_v16 = vmul.f32 2.0, %v359_v13  ;;  %v372_v18 = vld [vmem:[%s515_s0 + $0x48] sm:$0x3f] }
   0x6   :  { %v26_v17 = vmul.f32 2.0, %v364_v14  ;;  %v27_v19 = vmul.f32 2.0, %v372_v18  ;;  %s312_s0 = smov 60  }
   0xc   :  { %44 = vrot.lane.b32.xlu1 %v21_v9, %s310_s12  ;;  %40 = vrot.lane.b32.xlu0 %v19_v10, %s310_s12 }
   0xd   :  { %48 = vrot.lane.b32.xlu2 %v23_v11, %s310_s12 }
  0x14   :  { %52 = vrot.lane.b32.xlu1 %v25_v15, %s310_s12  ;;  %50 = vrot.lane.b32.xlu0 %v24_v16, %s310_s12 }
  0x15   :  { %54 = vrot.lane.b32.xlu2 %v26_v17, %s310_s12 }
  0x1c   :  { %98 = vrot.lane.b32.xlu1 %v8_v1, %s311_s27  ;;  %56 = vrot.lane.b32.xlu0 %v27_v19, %s310_s12 }
  0x1d   :  { %100 = vrot.lane.b32.xlu2 %v9_v7, %s311_s27 }
  0x24   :  { %104 = vrot.lane.b32.xlu1 %v11_v6, %s311_s27  ;;  %102 = vrot.lane.b32.xlu0 %v327_v0, %s311_s27 }
  0x25   :  { %106 = vrot.lane.b32.xlu2 %v336_v4, %s311_s27 }
  0x2c   :  { %110 = vrot.lane.b32.xlu1 %v359_v13, %s311_s27  ;;  %108 = vrot.lane.b32.xlu0 %v348_v8, %s311_s27 }
  0x2d   :  { %112 = vrot.lane.b32.xlu2 %v354_v12, %s311_s27 }
  0x34   :  { %116 = vrot.lane.b32.xlu1 %v372_v18, %s311_s27  ;;  %114 = vrot.lane.b32.xlu0 %v364_v14, %s311_s27 }
  0x5f   :  { %v47_v20 = vpop.permute.xlu2 %46 }
  0x67   :  { %v49_v21 = vpop.permute.xlu2 %48 }
  0x68   :  { %v63_v55 = vsel %vm58_vm0, %v47_v20, %v49_v21 }
  0x69   :  { %v82_v59 = vadd.f32 %v63_v55, %v336_v4 }
  0x6f   :  { %v382_v24 = vpop.permute.xlu2 %54 }
  0x76   :  { %v43_v22 = vpop.permute.xlu1 %42  ;;  %v39_v23 = vpop.permute.xlu0 %38 }
  0x77   :  { %v101_v29 = vpop.permute.xlu2 %100 }
  0x7e   :  { %v45_v25 = vpop.permute.xlu1 %44  ;;  %v41_v26 = vpop.permute.xlu0 %40 }
  0x7f   :  { %v59_v30 = vsel %vm58_vm0, %v39_v23, %v41_v26  ;;  %v107_v37 = vpop.permute.xlu2 %106  ;;  %v61_v38 = vsel %vm58_vm0, %v43_v22, %v45_v25  ;;  %v62_v39 = vsel %vm58_vm0, %v45_v25, %v47_v20  ;;  %v60_v40 = vsel %vm58_vm0, %v41_v26, %v43_v22 }
  0x80   :  { %v78_v31 = vadd.f32 %v59_v30, %v8_v1  ;;  %v80_v41 = vadd.f32 %v61_v38, %v327_v0  ;;  %v81_v42 = vadd.f32 %v62_v39, %v11_v6  ;;  %v79_v43 = vadd.f32 %v60_v40, %v9_v7 }
  0x86   :  { %v384_v27 = vpop.permute.xlu1 %52  ;;  %v51_v28 = vpop.permute.xlu0 %50 }
  0x87   :  { %v64_v56 = vsel %vm58_vm0, %v49_v21, %v51_v28  ;;  %v65_v57 = vsel %vm58_vm0, %v51_v28, %v384_v27  ;;  %v113_v58 = vpop.permute.xlu2 %112  ;;  %v66_v20 = vsel %vm58_vm0, %v384_v27, %v382_v24 }
  0x88   :  { %v83_v60 = vadd.f32 %v64_v56, %v348_v8  ;;  %v84_v61 = vadd.f32 %v65_v57, %v359_v13  ;;  %v85_v22 = vadd.f32 %v66_v20, %v354_v12 }
  0x8e   :  { %v99_v32 = vpop.permute.xlu1 %98  ;;  %v57_v33 = vpop.permute.xlu0 %56 }
  0x8f   :  { %v119_v34 = vsel %vm118_vm1, %v99_v32, %v101_v29  ;;  %v87_v8 = vadd.f32 %v57_v33, %v372_v18  ;;  %v67_v18 = vsel %vm58_vm0, %v382_v24, %v57_v33 }
  0x90   :  { %v138_v35 = vadd.f32 %v119_v34, %v78_v31  ;;  %v86_v25 = vadd.f32 %v67_v18, %v364_v14 }
  0x92   :  { %v388_v36 = vmul.f32 0.25, %v138_v35 }
  0x94   :  { %236 = vrot.lane.b32.xlu0 %v388_v36, %s312_s0  ;;  %v158_v27 = vmul.f32 2.0, %v388_v36 }
  0x96   :  { %v105_v44 = vpop.permute.xlu1 %104  ;;  %v103_v45 = vpop.permute.xlu0 %102 }
  0x97   :  { %v122_v46 = vsel %vm118_vm1, %v105_v44, %v107_v37  ;;  %v120_v47 = vsel %vm118_vm1, %v101_v29, %v103_v45  ;;  %v121_v48 = vsel %vm118_vm1, %v103_v45, %v105_v44 }
  0x98   :  { %v141_v49 = vadd.f32 %v122_v46, %v81_v42  ;;  %v139_v50 = vadd.f32 %v120_v47, %v79_v43  ;;  %v140_v51 = vadd.f32 %v121_v48, %v80_v41 }
  0x9a   :  { %v399_v52 = vmul.f32 0.25, %v141_v49  ;;  %v401_v53 = vmul.f32 0.25, %v139_v50  ;;  %v403_v54 = vmul.f32 0.25, %v140_v51 }
  0x9c   :  { %242 = vrot.lane.b32.xlu0 %v399_v52, %s312_s0  ;;  %240 = vrot.lane.b32.xlu2 %v403_v54, %s312_s0  ;;  %v159_v15 = vmul.f32 2.0, %v401_v53  ;;  %v160_v16 = vmul.f32 2.0, %v403_v54  ;;  %v161_v14 = vmul.f32 2.0, %v399_v52 }
  0x9d   :  { %238 = vrot.lane.b32.xlu1 %v401_v53, %s312_s0 }
  0x9e   :  { %v111_v62 = vpop.permute.xlu1 %110  ;;  %v109_v63 = vpop.permute.xlu0 %108 }
  0x9f   :  { %v125_v0 = vsel %vm118_vm1, %v111_v62, %v113_v58  ;;  %v123_v1 = vsel %vm118_vm1, %v107_v37, %v109_v63  ;;  %v124_v2 = vsel %vm118_vm1, %v109_v63, %v111_v62 }
  0xa0   :  { %v144_v3 = vadd.f32 %v125_v0, %v84_v61  ;;  %v142_v5 = vadd.f32 %v123_v1, %v82_v59  ;;  %v143_v6 = vadd.f32 %v124_v2, %v83_v60 }
  0xa2   :  { %v421_v7 = vmul.f32 0.25, %v144_v3  ;;  %v423_v9 = vmul.f32 0.25, %v142_v5  ;;  %v425_v4 = vmul.f32 0.25, %v143_v6 }
  0xa4   :  { %248 = vrot.lane.b32.xlu0 %v421_v7, %s312_s0  ;;  %246 = vrot.lane.b32.xlu2 %v425_v4, %s312_s0  ;;  %v162_v28 = vmul.f32 2.0, %v423_v9  ;;  %v163_v30 = vmul.f32 2.0, %v425_v4  ;;  %v164_v33 = vmul.f32 2.0, %v421_v7 }
  0xa5   :  { %244 = vrot.lane.b32.xlu1 %v423_v9, %s312_s0 }
  0xa6   :  { %v117_v10 = vpop.permute.xlu1 %116  ;;  %v115_v19 = vpop.permute.xlu0 %114 }
  0xa7   :  { %v147_v11 = vadd.f32 %v117_v10, %v87_v8  ;;  %v126_v21 = vsel %vm118_vm1, %v113_v58, %v115_v19  ;;  %v127_v23 = vsel %vm118_vm1, %v115_v19, %v117_v10 }
  0xa8   :  { %v145_v26 = vadd.f32 %v126_v21, %v85_v22  ;;  %v146_v29 = vadd.f32 %v127_v23, %v86_v25 }
  0xa9   :  { %v157_v13 = vmul.f32 0.25, %v147_v11 }
  0xaa   :  { %v448_v24 = vmul.f32 0.25, %v145_v26  ;;  %v450_v31 = vmul.f32 0.25, %v146_v29 }
  0xab   :  { %v167_v17 = vmul.f32 2.0, %v157_v13 }
  0xac   :  { %180 = vrot.lane.b32.xlu0 %v159_v15, %s313_s28  ;;  %v165_v12 = vmul.f32 2.0, %v448_v24  ;;  %v166_v32 = vmul.f32 2.0, %v450_v31 }
  0xad   :  { %182 = vrot.lane.b32.xlu1 %v160_v16, %s313_s28  ;;  %196 = vrot.lane.b32.xlu2 %v167_v17, %s313_s28 }
  0xb4   :  { %186 = vrot.lane.b32.xlu0 %v162_v28, %s313_s28 }
  0xb5   :  { %188 = vrot.lane.b32.xlu1 %v163_v30, %s313_s28  ;;  %178 = vrot.lane.b32.xlu2 %v158_v27, %s313_s28 }
  0xbc   :  { %192 = vrot.lane.b32.xlu0 %v165_v12, %s313_s28 }
  0xbd   :  { %194 = vrot.lane.b32.xlu1 %v166_v32, %s313_s28  ;;  %184 = vrot.lane.b32.xlu2 %v161_v14, %s313_s28 }
  0xc4   :  { %254 = vrot.lane.b32.xlu0 %v157_v13, %s312_s0 }
  0xc5   :  { %250 = vrot.lane.b32.xlu1 %v448_v24, %s312_s0  ;;  %190 = vrot.lane.b32.xlu2 %v164_v33, %s313_s28 }
  0xcd   :  { %252 = vrot.lane.b32.xlu2 %v450_v31, %s312_s0 }
  0xf6   :  { %v241_v34 = vpop.permute.xlu2 %240 }
  0xfe   :  { %v247_v35 = vpop.permute.xlu2 %246 }
 0x106   :  { %v237_v37 = vpop.permute.xlu0 %236 }
 0x107   :  { %v197_v38 = vpop.permute.xlu2 %196 }
 0x10e   :  { %v243_v39 = vpop.permute.xlu0 %242 }
 0x10f   :  { %v239_v40 = vpop.permute.xlu1 %238  ;;  %v179_v41 = vpop.permute.xlu2 %178  ;;  %v259_v58 = vsel %vm256_vm3, %v241_v34, %v243_v39 }
 0x110   :  { %v257_v51 = vsel %vm256_vm3, %v237_v37, %v239_v40  ;;  %v258_v57 = vsel %vm256_vm3, %v239_v40, %v241_v34 }
 0x116   :  { %v249_v42 = vpop.permute.xlu0 %248 }
 0x117   :  { %v245_v43 = vpop.permute.xlu1 %244  ;;  %v185_v44 = vpop.permute.xlu2 %184  ;;  %v262_v13 = vsel %vm256_vm3, %v247_v35, %v249_v42 }
 0x118   :  { %v260_v6 = vsel %vm256_vm3, %v243_v39, %v245_v43  ;;  %v261_v11 = vsel %vm256_vm3, %v245_v43, %v247_v35 }
 0x11e   :  { %v181_v45 = vpop.permute.xlu0 %180 }
 0x11f   :  { %v183_v46 = vpop.permute.xlu1 %182  ;;  %v199_v47 = vsel %vm198_vm2, %v179_v41, %v181_v45 }
 0x120   :  { %v201_v48 = vsel %vm198_vm2, %v183_v46, %v185_v44  ;;  %v200_v49 = vsel %vm198_vm2, %v181_v45, %v183_v46  ;;  %v217_v50 = vadd.f32 %v199_v47, %v388_v36 }
 0x121   :  { %v219_v55 = vadd.f32 %v201_v48, %v403_v54  ;;  %v218_v56 = vadd.f32 %v200_v49, %v401_v53  ;;  %v191_v53 = vpop.permute.xlu2 %190 }
 0x122   :  { %v275_v59 = vadd.f32 %v257_v51, %v217_v50 }
 0x123   :  { %v277_v60 = vadd.f32 %v259_v58, %v219_v55  ;;  %v276_v61 = vadd.f32 %v258_v57, %v218_v56 }
 0x124   :  { %v284_v62 = vmul.f32 0.25, %v275_v59 }
 0x125   :  { %v286_v63 = vmul.f32 0.25, %v277_v60  ;;  %v285_v0 = vmul.f32 0.25, %v276_v61 }
 0x126   :  { %293 = vst [vmem:[%s516_s1] sm:$0x3f] %v284_v62  ;;  %v187_v36 = vpop.permute.xlu0 %186 }
 0x127   :  { %295 = vst [vmem:[%s516_s1 + $0x10] sm:$0x3f] %v286_v63  ;;  %v189_v54 = vpop.permute.xlu1 %188  ;;  %v202_v1 = vsel %vm198_vm2, %v185_v44, %v187_v36 }
 0x128   :  { %294 = vst [vmem:[%s516_s1 + $0x8] sm:$0x3f] %v285_v0  ;;  %v204_v2 = vsel %vm198_vm2, %v189_v54, %v191_v53  ;;  %v203_v3 = vsel %vm198_vm2, %v187_v36, %v189_v54  ;;  %v220_v5 = vadd.f32 %v202_v1, %v399_v52 }
 0x129   :  { %v222_v8 = vadd.f32 %v204_v2, %v425_v4  ;;  %v221_v10 = vadd.f32 %v203_v3, %v423_v9  ;;  %v253_v23 = vpop.permute.xlu2 %252 }
 0x12a   :  { %v278_v15 = vadd.f32 %v260_v6, %v220_v5 }
 0x12b   :  { %v280_v16 = vadd.f32 %v262_v13, %v222_v8  ;;  %v279_v17 = vadd.f32 %v261_v11, %v221_v10 }
 0x12c   :  { %v287_v19 = vmul.f32 0.25, %v278_v15 }
 0x12d   :  { %v289_v20 = vmul.f32 0.25, %v280_v16  ;;  %v288_v18 = vmul.f32 0.25, %v279_v17 }
 0x12e   :  { %296 = vst [vmem:[%s516_s1 + $0x18] sm:$0x3f] %v287_v19  ;;  %v193_v52 = vpop.permute.xlu0 %192 }
 0x12f   :  { %298 = vst [vmem:[%s516_s1 + $0x28] sm:$0x3f] %v289_v20  ;;  %v195_v9 = vpop.permute.xlu1 %194  ;;  %v205_v21 = vsel %vm198_vm2, %v191_v53, %v193_v52 }
 0x130   :  { %297 = vst [vmem:[%s516_s1 + $0x20] sm:$0x3f] %v288_v18  ;;  %v207_v4 = vsel %vm198_vm2, %v195_v9, %v197_v38  ;;  %v206_v22 = vsel %vm198_vm2, %v193_v52, %v195_v9  ;;  %v223_v28 = vadd.f32 %v205_v21, %v421_v7 }
 0x131   :  { %v225_v25 = vadd.f32 %v207_v4, %v450_v31  ;;  %v224_v29 = vadd.f32 %v206_v22, %v448_v24 }
 0x136   :  { %v255_v26 = vpop.permute.xlu0 %254 }
 0x137   :  { %v251_v30 = vpop.permute.xlu1 %250  ;;  %v265_v27 = vsel %vm256_vm3, %v253_v23, %v255_v26 }
 0x138   :  { %v263_v12 = vsel %vm256_vm3, %v249_v42, %v251_v30  ;;  %v264_v32 = vsel %vm256_vm3, %v251_v30, %v253_v23  ;;  %v283_v14 = vadd.f32 %v265_v27, %v225_v25 }
 0x139   :  { %v281_v33 = vadd.f32 %v263_v12, %v223_v28  ;;  %v282_v34 = vadd.f32 %v264_v32, %v224_v29 }
 0x13a   :  { %v292_v35 = vmul.f32 0.25, %v283_v14 }
 0x13b   :  { %v290_v37 = vmul.f32 0.25, %v281_v33  ;;  %v291_v38 = vmul.f32 0.25, %v282_v34 }
 0x13c   :  { %301 = vst [vmem:[%s516_s1 + $0x40] sm:$0x3f] %v292_v35 }
 0x13d   :  { %299 = vst [vmem:[%s516_s1 + $0x30] sm:$0x3f] %v290_v37 }
 0x13e   :  { %300 = vst [vmem:[%s516_s1 + $0x38] sm:$0x3f] %v291_v38 }

</bundles_post_ra>
